<compile_context>
chip_gen: v6e
topology: v6e:2x2x1
jax: 0.10.0
libtpu: 0.0.40
codegen_flags: <defaults>
</compile_context>

<pallas_src>
import functools

import jax
import jax.numpy as jnp
from jax.experimental import pallas as pl
from jax.experimental.pallas import tpu as pltpu

SELU_ALPHA = 1.6732632423543772
SELU_SCALE = 1.0507009873554805
EPS = 1e-5


def _elu(x):
    # exp evaluated only on the clamped-negative branch (no wasted EUP work / inf).
    return jnp.where(x > 0, x, jnp.exp(jnp.minimum(x, 0.0)) - 1.0)


def _selu(x):
    return SELU_SCALE * jnp.where(
        x > 0, x, SELU_ALPHA * (jnp.exp(jnp.minimum(x, 0.0)) - 1.0))


# ----------------------------- fused Pallas kernel -----------------------------

def _particlenet_kernel(x_ref, src_col_ref, dst_col_ref, batch_col_ref,
                        gn_ref, qkvs_w_ref, qkvs_b_ref,
                        c2_nodew_ref, c2_mats_ref, c2_vecs_ref,
                        c3_nodew_ref, c3_mats_ref, c3_vecs_ref,
                        head_mats_ref, head_vecs_ref, out_w_ref, out_b_ref,
                        o_ref):
    f32, bf16 = jnp.float32, jnp.bfloat16
    x = x_ref[...]                                  # [N, C] f32
    N = x.shape[0]
    E = src_col_ref.shape[0]
    G = o_ref.shape[0]
    H = qkvs_w_ref.shape[1] // 4

    def bf(a):
        return a.astype(bf16)

    def mm(a, b):
        # bf16 operands (MXU-native on v5e/v6e/v7x), f32 accumulation.
        return jnp.dot(bf(a), bf(b), preferred_element_type=f32)

    def scatter(onehot, msgs):
        # Segment-sum: contract over the leading (edge / node) axis of the one-hot,
        # i.e. one_hot^T @ msgs, WITHOUT materializing the transposed one-hot.
        return jax.lax.dot_general(bf(onehot), bf(msgs),
                                   (((0,), (0,)), ((), ())),
                                   preferred_element_type=f32)

    # ---- bf16 one-hot selection matrices (the only quadratic buffers) ----
    lane_node = jax.lax.broadcasted_iota(jnp.int32, (E, N), 1)
    gs = (lane_node == src_col_ref[...]).astype(f32).astype(bf16)   # [E,N] gather x_j (source)
    gd = (lane_node == dst_col_ref[...]).astype(f32).astype(bf16)   # [E,N] gather x_i (target) / scatter
    b_oh = (jax.lax.broadcasted_iota(jnp.int32, (N, G), 1)
            == batch_col_ref[...]).astype(f32).astype(bf16)         # [N,G]

    ones_e = jnp.ones((E, 1), bf16)
    ones_n = jnp.ones((N, 1), bf16)
    deg = scatter(gd, ones_e)                                       # [N,1] in-degree
    counts = scatter(b_oh, ones_n)                                  # [G,1] nodes / graph
    inv_deg = pl.reciprocal(jnp.maximum(deg, 1.0), approx=True)
    inv_counts = pl.reciprocal(jnp.maximum(counts, 1.0), approx=True)

    # ---- GraphNorm (per-graph, per-channel) ----
    gn = gn_ref[...]                                 # [3, C]: weight, bias, mean_scale
    gn_w, gn_bias, gn_ms = gn[0:1, :], gn[1:2, :], gn[2:3, :]
    mean_g = scatter(b_oh, x) * inv_counts           # [G, C]
    mean_n = mm(b_oh, mean_g)                        # gather per-graph mean -> [N, C]
    xc = x - mean_n * gn_ms
    var_n = mm(b_oh, scatter(b_oh, xc * xc) * inv_counts)
    x0 = xc * jax.lax.rsqrt(var_n + EPS) * gn_w + gn_bias           # [N, C]

    # ---- TransformerConv (heads=1): lane-dense packed projection [q|skip|k|v] ----
    qkvs = mm(x0, qkvs_w_ref[...]) + qkvs_b_ref[...]                # [N, 4H] (128 lanes)
    q = qkvs[:, 0:H]
    skip = qkvs[:, H:2 * H]
    kv = qkvs[:, 2 * H:4 * H]                                       # [N, 2H]
    q_d = mm(gd, q)                                                 # query_i (target) [E, H]
    kv_s = mm(gs, kv)                                               # key/value_j (source) [E, 2H]
    k_s = kv_s[:, 0:H]
    v_s = kv_s[:, H:2 * H]
    scores = jnp.sum(q_d * k_s, axis=-1, keepdims=True) * (1.0 / float(H) ** 0.5)  # [E,1]
    # Segment softmax without any [E,N] f32 temporaries: subtracting the GLOBAL max
    # (constant within every segment) yields exactly the same softmax as PyG's
    # per-segment-max version; normalization happens once per node after the scatter.
    pexp = jnp.exp(scores - jnp.max(scores, axis=0, keepdims=True))  # [E,1] f32
    psum = scatter(gd, pexp)                                         # [N,1] per-node denom
    unnorm = scatter(gd, pexp * v_s)                                 # [N,H] numerator @ v_j
    attn = unnorm * pl.reciprocal(jnp.maximum(psum, 1e-30), approx=True)
    conv1 = _elu(attn + skip)                                        # F.elu(conv1)

    # ---- DynamicEdgeConv (mean aggregation + ReLU-linear shortcut, BN folded) ----
    def dyn_edge_conv(x_in, nodew_ref, mats_ref, vecs_ref):
        # cat([x_i, x_j - x_i]) @ W1 == x_i @ (W1a - W1b) + x_j @ W1b, so the first
        # MLP layer and the shortcut are projected once per NODE with a single
        # lane-dense [H, 3H] matmul, and only the small projections get gathered.
        nodew = nodew_ref[...]                       # [H, 3H] = [W1a-W1b | W1b | sc_w]
        mats = mats_ref[...]                         # [2, H, H] = [w2, w3]
        vecs = vecs_ref[...]                         # [10, H]: b1,s1,t1,b2,s2,t2,b3,s3,t3,sc_b
        p = mm(x_in, nodew)                          # [N, 3H]
        pa = p[:, 0:H]                               # x @ (W1a - W1b)  (gather at target)
        pb = p[:, H:2 * H]                           # x @ W1b          (gather at source)
        sc = jnp.maximum(p[:, 2 * H:3 * H] + vecs[9:10], 0.0)        # shortcut (node level)
        h = mm(gd, pa) + mm(gs, pb) + vecs[0:1]                      # layer-1 pre-act [E, H]
        h = jnp.maximum(h, 0.0) * vecs[1:2] + vecs[2:3]              # ReLU + BN (eval, folded)
        h = mm(h, mats[0]) + vecs[3:4]
        h = jnp.maximum(h, 0.0) * vecs[4:5] + vecs[5:6]
        h = mm(h, mats[1]) + vecs[6:7]
        h = jnp.maximum(h, 0.0) * vecs[7:8] + vecs[8:9]
        agg = scatter(gd, h) * inv_deg                               # mean aggregation [N, H]
        return agg + sc

    conv2 = dyn_edge_conv(conv1, c2_nodew_ref, c2_mats_ref, c2_vecs_ref)
    conv3 = dyn_edge_conv(conv2, c3_nodew_ref, c3_mats_ref, c3_vecs_ref)

    # ---- head: sum -> global_mean_pool -> BN -> SELU denses -> output -> log_softmax ----
    pooled = scatter(b_oh, conv1 + conv2 + conv3) * inv_counts       # [G, H]
    hm = head_mats_ref[...]                          # [2, H, H]: d1_w, d2_w
    hv = head_vecs_ref[...]                          # [4, H]: bn0_s, bn0_t, d1_b, d2_b
    z = pooled * hv[0:1] + hv[1:2]                   # BatchNorm1d (eval, folded)
    z = _selu(mm(z, hm[0]) + hv[2:3])
    z = _selu(mm(z, hm[1]) + hv[3:4])
    z = mm(z, out_w_ref[...]) + out_b_ref[...]       # [G, OUT]
    zz = z - jnp.max(z, axis=-1, keepdims=True)      # log_softmax(dim=1)
    o_ref[...] = zz - jnp.log(jnp.sum(jnp.exp(zz), axis=-1, keepdims=True))


# ----------------------------- wrapper -----------------------------

def particlenet_forward(params, x, edge_src, edge_dst, batch, num_graphs):
    N = x.shape[0]
    E = edge_src.shape[0]
    H = params["qkvs_w"].shape[1] // 4
    out_channels = params["out_w"].shape[1]
    args = (
        x,
        edge_src.reshape(E, 1).astype(jnp.int32),
        edge_dst.reshape(E, 1).astype(jnp.int32),
        batch.reshape(N, 1).astype(jnp.int32),
        params["gn"], params["qkvs_w"], params["qkvs_b"],
        params["c2_nodew"], params["c2_mats"], params["c2_vecs"],
        params["c3_nodew"], params["c3_mats"], params["c3_vecs"],
        params["head_mats"], params["head_vecs"],
        params["out_w"], params["out_b"],
    )
    # VMEM budget: bf16 one-hots (the quadratic buffers) + f32 activations + params
    # (double-buffered DMA) + headroom; never below the 32 MiB scoped default.
    onehot_bytes = 2 * (2 * E * N + N * num_graphs)
    act_bytes = 4 * (8 * E * H + 16 * N * H + 8 * num_graphs * H)
    param_bytes = 4 * sum(int(p.size) for p in params.values())
    vmem_limit = int(min(96 * 1024 * 1024,
                         max(32 * 1024 * 1024,
                             4 * 1024 * 1024
                             + 2 * (onehot_bytes + act_bytes + 2 * param_bytes))))
    # Single whole-array pallas_call: everything stays VMEM/vreg resident, so there is
    # exactly one kernel launch and no HBM round trips between layers.
    return pl.pallas_call(
        _particlenet_kernel,
        out_shape=jax.ShapeDtypeStruct((num_graphs, out_channels), jnp.float32),
        in_specs=[pl.BlockSpec(memory_space=pltpu.MemorySpace.VMEM)] * len(args),
        out_specs=pl.BlockSpec(memory_space=pltpu.MemorySpace.VMEM),
        compiler_params=pltpu.CompilerParams(vmem_limit_bytes=vmem_limit),
    )(*args)


# ----------------------------- parameters -----------------------------

def init_params(key, in_channels, hidden, out_channels):
    ks = iter(jax.random.split(key, 64))

    def w(shape, scale=0.1):
        return scale * jax.random.normal(next(ks), shape, jnp.float32)

    def bn_fold(hdim):
        gamma = 1.0 + 0.05 * jax.random.normal(next(ks), (hdim,), jnp.float32)
        beta = 0.05 * jax.random.normal(next(ks), (hdim,), jnp.float32)
        # eval-mode BN with running_mean=0, running_var=1
        return gamma / jnp.sqrt(1.0 + EPS), beta

    p = {}
    # GraphNorm(in_channels): rows = [weight, bias, mean_scale]
    p["gn"] = jnp.stack([jnp.ones((in_channels,), jnp.float32),
                         jnp.zeros((in_channels,), jnp.float32),
                         jnp.ones((in_channels,), jnp.float32)])

    # TransformerConv(in_channels, hidden), heads=1: packed [q|skip|k|v] -> [C, 4H]
    p["qkvs_w"] = w((in_channels, 4 * hidden))
    p["qkvs_b"] = w((1, 4 * hidden), 0.05)

    # DynamicEdgeConv x2:
    #   nodew = [W1a - W1b | W1b | sc_w]   (node-level fused layer-1 + shortcut)
    #   mats  = [w2, w3]
    #   vecs  = [b1,s1,t1,b2,s2,t2,b3,s3,t3,sc_b]
    for conv in ("c2", "c3"):
        w1a, w1b, sc_w = w((hidden, hidden)), w((hidden, hidden)), w((hidden, hidden))
        p[f"{conv}_nodew"] = jnp.concatenate([w1a - w1b, w1b, sc_w], axis=1)
        p[f"{conv}_mats"] = jnp.stack([w((hidden, hidden)) for _ in range(2)])
        vecs = []
        for _layer in range(3):
            b = w((hidden,), 0.05)
            s, t = bn_fold(hidden)
            vecs += [b, s, t]
        vecs.append(w((hidden,), 0.05))          # shortcut bias
        p[f"{conv}_vecs"] = jnp.stack(vecs)

    # head: mats = [d1_w, d2_w]; vecs = [bn0_s, bn0_t, d1_b, d2_b]
    bn0_s, bn0_t = bn_fold(hidden)
    p["head_mats"] = jnp.stack([w((hidden, hidden)), w((hidden, hidden))])
    p["head_vecs"] = jnp.stack([bn0_s, bn0_t, w((hidden,), 0.05), w((hidden,), 0.05)])
    p["out_w"] = w((hidden, out_channels))
    p["out_b"] = w((1, out_channels), 0.05)
    return p


# ----------------------------- main -----------------------------

if __name__ == "__main__":
    in_channels = 4
    hidden_channels = 32
    out_channels = 3
    num_graphs = 2
    nodes_per_graph = 8
    N = num_graphs * nodes_per_graph

    key = jax.random.PRNGKey(0)
    kx, kp = jax.random.split(key)
    x = jax.random.normal(kx, (N, in_channels), jnp.float32)

    # k=4 ring-neighbour edges within each graph; edge_index = [source, target]
    src, dst = [], []
    for g in range(num_graphs):
        for i in range(nodes_per_graph):
            for off in (1, 2, -1, -2):
                src.append(g * nodes_per_graph + (i + off) % nodes_per_graph)
                dst.append(g * nodes_per_graph + i)
    edge_src = jnp.array(src, dtype=jnp.int32)
    edge_dst = jnp.array(dst, dtype=jnp.int32)
    batch = jnp.repeat(jnp.arange(num_graphs, dtype=jnp.int32), nodes_per_graph)

    params = init_params(kp, in_channels, hidden_channels, out_channels)

    fwd = jax.jit(functools.partial(particlenet_forward, num_graphs=num_graphs))
    logp = fwd(params, x, edge_src, edge_dst, batch)
    jax.block_until_ready(logp)

    assert logp.shape == (num_graphs, out_channels)
    # log_softmax rows must sum to ~1 in prob space
    assert jnp.allclose(jnp.sum(jnp.exp(logp), axis=1), 1.0, atol=1e-4)
    print("KERNEL_OK")
</pallas_src>

<mosaic_0001>
module attributes {stable_mosaic.version = 11 : i64} {
  func.func @_particlenet_kernel(%arg0: memref<16x4xf32, #tpu.memory_space<vmem>>, %arg1: memref<64x1xi32, #tpu.memory_space<vmem>>, %arg2: memref<64x1xi32, #tpu.memory_space<vmem>>, %arg3: memref<16x1xi32, #tpu.memory_space<vmem>>, %arg4: memref<3x4xf32, #tpu.memory_space<vmem>>, %arg5: memref<4x128xf32, #tpu.memory_space<vmem>>, %arg6: memref<1x128xf32, #tpu.memory_space<vmem>>, %arg7: memref<32x96xf32, #tpu.memory_space<vmem>>, %arg8: memref<2x32x32xf32, #tpu.memory_space<vmem>>, %arg9: memref<10x32xf32, #tpu.memory_space<vmem>>, %arg10: memref<32x96xf32, #tpu.memory_space<vmem>>, %arg11: memref<2x32x32xf32, #tpu.memory_space<vmem>>, %arg12: memref<10x32xf32, #tpu.memory_space<vmem>>, %arg13: memref<2x32x32xf32, #tpu.memory_space<vmem>>, %arg14: memref<4x32xf32, #tpu.memory_space<vmem>>, %arg15: memref<32x3xf32, #tpu.memory_space<vmem>>, %arg16: memref<1x3xf32, #tpu.memory_space<vmem>>, %arg17: memref<2x3xf32, #tpu.memory_space<vmem>>) attributes {dimension_semantics = [], scalar_prefetch = 0 : i64, scratch_operands = 0 : i64, tpu.core_type = #tpu.core_type<tc>} {
    %c0 = arith.constant 0 : index
    %c0_0 = arith.constant 0 : index
    %0 = vector.load %arg0[%c0, %c0_0] : memref<16x4xf32, #tpu.memory_space<vmem>>, vector<16x4xf32>
    %1 = tpu.iota {dimensions = array<i32: 1>} : vector<64x16xi32>
    %c0_1 = arith.constant 0 : index
    %c0_2 = arith.constant 0 : index
    %2 = vector.load %arg1[%c0_1, %c0_2] : memref<64x1xi32, #tpu.memory_space<vmem>>, vector<64x1xi32>
    %3 = vector.broadcast %2 : vector<64x1xi32> to vector<64x16xi32>
    %4 = arith.cmpi eq, %1, %3 : vector<64x16xi32>
    %5 = arith.extui %4 : vector<64x16xi1> to vector<64x16xi32>
    %6 = arith.sitofp %5 : vector<64x16xi32> to vector<64x16xf32>
    %7 = arith.truncf %6 : vector<64x16xf32> to vector<64x16xbf16>
    %c0_3 = arith.constant 0 : index
    %c0_4 = arith.constant 0 : index
    %8 = vector.load %arg2[%c0_3, %c0_4] : memref<64x1xi32, #tpu.memory_space<vmem>>, vector<64x1xi32>
    %9 = vector.broadcast %8 : vector<64x1xi32> to vector<64x16xi32>
    %10 = arith.cmpi eq, %1, %9 : vector<64x16xi32>
    %11 = arith.extui %10 : vector<64x16xi1> to vector<64x16xi32>
    %12 = arith.sitofp %11 : vector<64x16xi32> to vector<64x16xf32>
    %13 = arith.truncf %12 : vector<64x16xf32> to vector<64x16xbf16>
    %14 = tpu.iota {dimensions = array<i32: 1>} : vector<16x2xi32>
    %c0_5 = arith.constant 0 : index
    %c0_6 = arith.constant 0 : index
    %15 = vector.load %arg3[%c0_5, %c0_6] : memref<16x1xi32, #tpu.memory_space<vmem>>, vector<16x1xi32>
    %16 = vector.broadcast %15 : vector<16x1xi32> to vector<16x2xi32>
    %17 = arith.cmpi eq, %14, %16 : vector<16x2xi32>
    %18 = arith.extui %17 : vector<16x2xi1> to vector<16x2xi32>
    %19 = arith.sitofp %18 : vector<16x2xi32> to vector<16x2xf32>
    %20 = arith.truncf %19 : vector<16x2xf32> to vector<16x2xbf16>
    %cst = arith.constant 1.000000e+00 : bf16
    %21 = vector.broadcast %cst : bf16 to vector<64x1xbf16>
    %cst_7 = arith.constant 1.000000e+00 : bf16
    %22 = vector.broadcast %cst_7 : bf16 to vector<16x1xbf16>
    %cst_8 = arith.constant dense<0.000000e+00> : vector<16x1xf32>
    %23 = tpu.matmul %13, %21, %cst_8 {dimension_numbers = #tpu.dot_dimension_numbers<[0], [0], [1], [1], [0, 1, 1, 1], [], []>} : vector<64x16xbf16>, vector<64x1xbf16>, vector<16x1xf32> -> vector<16x1xf32>
    %cst_9 = arith.constant dense<0.000000e+00> : vector<2x1xf32>
    %24 = tpu.matmul %20, %22, %cst_9 {dimension_numbers = #tpu.dot_dimension_numbers<[0], [0], [1], [1], [0, 1, 1, 1], [], []>} : vector<16x2xbf16>, vector<16x1xbf16>, vector<2x1xf32> -> vector<2x1xf32>
    %cst_10 = arith.constant 1.000000e+00 : f32
    %25 = vector.broadcast %cst_10 : f32 to vector<16x1xf32>
    %26 = arith.maximumf %23, %25 : vector<16x1xf32>
    %27 = tpu.reciprocal %26 {approx = true} : vector<16x1xf32> -> vector<16x1xf32>
    %cst_11 = arith.constant 1.000000e+00 : f32
    %28 = vector.broadcast %cst_11 : f32 to vector<2x1xf32>
    %29 = arith.maximumf %24, %28 : vector<2x1xf32>
    %30 = tpu.reciprocal %29 {approx = true} : vector<2x1xf32> -> vector<2x1xf32>
    %c0_12 = arith.constant 0 : index
    %c0_13 = arith.constant 0 : index
    %31 = vector.load %arg4[%c0_12, %c0_13] : memref<3x4xf32, #tpu.memory_space<vmem>>, vector<3x4xf32>
    %32 = vector.extract_strided_slice %31 {offsets = [0, 0], sizes = [1, 4], strides = [1, 1]} : vector<3x4xf32> to vector<1x4xf32>
    %33 = vector.extract_strided_slice %31 {offsets = [1, 0], sizes = [1, 4], strides = [1, 1]} : vector<3x4xf32> to vector<1x4xf32>
    %34 = vector.extract_strided_slice %31 {offsets = [2, 0], sizes = [1, 4], strides = [1, 1]} : vector<3x4xf32> to vector<1x4xf32>
    %35 = arith.truncf %0 : vector<16x4xf32> to vector<16x4xbf16>
    %cst_14 = arith.constant dense<0.000000e+00> : vector<2x4xf32>
    %36 = tpu.matmul %20, %35, %cst_14 {dimension_numbers = #tpu.dot_dimension_numbers<[0], [0], [1], [1], [0, 1, 1, 1], [], []>} : vector<16x2xbf16>, vector<16x4xbf16>, vector<2x4xf32> -> vector<2x4xf32>
    %37 = vector.broadcast %30 : vector<2x1xf32> to vector<2x4xf32>
    %38 = arith.mulf %36, %37 : vector<2x4xf32>
    %39 = arith.truncf %38 : vector<2x4xf32> to vector<2x4xbf16>
    %cst_15 = arith.constant dense<0.000000e+00> : vector<16x4xf32>
    %40 = tpu.matmul %20, %39, %cst_15 {dimension_numbers = #tpu.dot_dimension_numbers<[1], [0], [0], [1], [0, 0, 1, 1], [], []>} : vector<16x2xbf16>, vector<2x4xbf16>, vector<16x4xf32> -> vector<16x4xf32>
    %41 = vector.broadcast %34 : vector<1x4xf32> to vector<16x4xf32>
    %42 = arith.mulf %40, %41 : vector<16x4xf32>
    %43 = arith.subf %0, %42 : vector<16x4xf32>
    %44 = arith.mulf %43, %43 : vector<16x4xf32>
    %45 = arith.truncf %44 : vector<16x4xf32> to vector<16x4xbf16>
    %cst_16 = arith.constant dense<0.000000e+00> : vector<2x4xf32>
    %46 = tpu.matmul %20, %45, %cst_16 {dimension_numbers = #tpu.dot_dimension_numbers<[0], [0], [1], [1], [0, 1, 1, 1], [], []>} : vector<16x2xbf16>, vector<16x4xbf16>, vector<2x4xf32> -> vector<2x4xf32>
    %47 = vector.broadcast %30 : vector<2x1xf32> to vector<2x4xf32>
    %48 = arith.mulf %46, %47 : vector<2x4xf32>
    %49 = arith.truncf %48 : vector<2x4xf32> to vector<2x4xbf16>
    %cst_17 = arith.constant dense<0.000000e+00> : vector<16x4xf32>
    %50 = tpu.matmul %20, %49, %cst_17 {dimension_numbers = #tpu.dot_dimension_numbers<[1], [0], [0], [1], [0, 0, 1, 1], [], []>} : vector<16x2xbf16>, vector<2x4xbf16>, vector<16x4xf32> -> vector<16x4xf32>
    %cst_18 = arith.constant 9.99999974E-6 : f32
    %51 = vector.broadcast %cst_18 : f32 to vector<16x4xf32>
    %52 = arith.addf %50, %51 : vector<16x4xf32>
    %53 = math.rsqrt %52 : vector<16x4xf32>
    %54 = arith.mulf %43, %53 : vector<16x4xf32>
    %55 = vector.broadcast %32 : vector<1x4xf32> to vector<16x4xf32>
    %56 = arith.mulf %54, %55 : vector<16x4xf32>
    %57 = vector.broadcast %33 : vector<1x4xf32> to vector<16x4xf32>
    %58 = arith.addf %56, %57 : vector<16x4xf32>
    %c0_19 = arith.constant 0 : index
    %c0_20 = arith.constant 0 : index
    %59 = vector.load %arg5[%c0_19, %c0_20] : memref<4x128xf32, #tpu.memory_space<vmem>>, vector<4x128xf32>
    %60 = arith.truncf %58 : vector<16x4xf32> to vector<16x4xbf16>
    %61 = arith.truncf %59 : vector<4x128xf32> to vector<4x128xbf16>
    %cst_21 = arith.constant dense<0.000000e+00> : vector<16x128xf32>
    %62 = tpu.matmul %60, %61, %cst_21 {dimension_numbers = #tpu.dot_dimension_numbers<[1], [0], [0], [1], [0, 0, 1, 1], [], []>} : vector<16x4xbf16>, vector<4x128xbf16>, vector<16x128xf32> -> vector<16x128xf32>
    %c0_22 = arith.constant 0 : index
    %c0_23 = arith.constant 0 : index
    %63 = vector.load %arg6[%c0_22, %c0_23] : memref<1x128xf32, #tpu.memory_space<vmem>>, vector<1x128xf32>
    %64 = vector.broadcast %63 : vector<1x128xf32> to vector<16x128xf32>
    %65 = arith.addf %62, %64 : vector<16x128xf32>
    %66 = vector.extract_strided_slice %65 {offsets = [0, 0], sizes = [16, 32], strides = [1, 1]} : vector<16x128xf32> to vector<16x32xf32>
    %67 = vector.extract_strided_slice %65 {offsets = [0, 32], sizes = [16, 32], strides = [1, 1]} : vector<16x128xf32> to vector<16x32xf32>
    %68 = vector.extract_strided_slice %65 {offsets = [0, 64], sizes = [16, 64], strides = [1, 1]} : vector<16x128xf32> to vector<16x64xf32>
    %69 = arith.truncf %66 : vector<16x32xf32> to vector<16x32xbf16>
    %cst_24 = arith.constant dense<0.000000e+00> : vector<64x32xf32>
    %70 = tpu.matmul %13, %69, %cst_24 {dimension_numbers = #tpu.dot_dimension_numbers<[1], [0], [0], [1], [0, 0, 1, 1], [], []>} : vector<64x16xbf16>, vector<16x32xbf16>, vector<64x32xf32> -> vector<64x32xf32>
    %71 = arith.truncf %68 : vector<16x64xf32> to vector<16x64xbf16>
    %cst_25 = arith.constant dense<0.000000e+00> : vector<64x64xf32>
    %72 = tpu.matmul %7, %71, %cst_25 {dimension_numbers = #tpu.dot_dimension_numbers<[1], [0], [0], [1], [0, 0, 1, 1], [], []>} : vector<64x16xbf16>, vector<16x64xbf16>, vector<64x64xf32> -> vector<64x64xf32>
    %73 = vector.extract_strided_slice %72 {offsets = [0, 0], sizes = [64, 32], strides = [1, 1]} : vector<64x64xf32> to vector<64x32xf32>
    %74 = vector.extract_strided_slice %72 {offsets = [0, 32], sizes = [64, 32], strides = [1, 1]} : vector<64x64xf32> to vector<64x32xf32>
    %75 = arith.mulf %70, %73 : vector<64x32xf32>
    %cst_26 = arith.constant dense<0.000000e+00> : vector<64xf32>
    %76 = vector.multi_reduction <add>, %75, %cst_26 [1] : vector<64x32xf32> to vector<64xf32>
    %77 = vector.shape_cast %76 : vector<64xf32> to vector<64x1xf32>
    %cst_27 = arith.constant 0.176776692 : f32
    %78 = vector.broadcast %cst_27 : f32 to vector<64x1xf32>
    %79 = arith.mulf %77, %78 : vector<64x1xf32>
    %cst_28 = arith.constant dense<0xFF800000> : vector<1xf32>
    %80 = vector.multi_reduction <maximumf>, %79, %cst_28 [0] : vector<64x1xf32> to vector<1xf32>
    %81 = vector.shape_cast %80 : vector<1xf32> to vector<1x1xf32>
    %82 = vector.broadcast %81 : vector<1x1xf32> to vector<64x1xf32>
    %83 = arith.subf %79, %82 : vector<64x1xf32>
    %84 = math.exp %83 : vector<64x1xf32>
    %85 = arith.truncf %84 : vector<64x1xf32> to vector<64x1xbf16>
    %cst_29 = arith.constant dense<0.000000e+00> : vector<16x1xf32>
    %86 = tpu.matmul %13, %85, %cst_29 {dimension_numbers = #tpu.dot_dimension_numbers<[0], [0], [1], [1], [0, 1, 1, 1], [], []>} : vector<64x16xbf16>, vector<64x1xbf16>, vector<16x1xf32> -> vector<16x1xf32>
    %87 = vector.broadcast %84 : vector<64x1xf32> to vector<64x32xf32>
    %88 = arith.mulf %87, %74 : vector<64x32xf32>
    %89 = arith.truncf %88 : vector<64x32xf32> to vector<64x32xbf16>
    %cst_30 = arith.constant dense<0.000000e+00> : vector<16x32xf32>
    %90 = tpu.matmul %13, %89, %cst_30 {dimension_numbers = #tpu.dot_dimension_numbers<[0], [0], [1], [1], [0, 1, 1, 1], [], []>} : vector<64x16xbf16>, vector<64x32xbf16>, vector<16x32xf32> -> vector<16x32xf32>
    %cst_31 = arith.constant 1.000000e-30 : f32
    %91 = vector.broadcast %cst_31 : f32 to vector<16x1xf32>
    %92 = arith.maximumf %86, %91 : vector<16x1xf32>
    %93 = tpu.reciprocal %92 {approx = true} : vector<16x1xf32> -> vector<16x1xf32>
    %94 = vector.broadcast %93 : vector<16x1xf32> to vector<16x32xf32>
    %95 = arith.mulf %90, %94 : vector<16x32xf32>
    %96 = arith.addf %95, %67 : vector<16x32xf32>
    %cst_32 = arith.constant 0.000000e+00 : f32
    %97 = vector.broadcast %cst_32 : f32 to vector<16x32xf32>
    %98 = arith.cmpf ogt, %96, %97 : vector<16x32xf32>
    %cst_33 = arith.constant 0.000000e+00 : f32
    %99 = vector.broadcast %cst_33 : f32 to vector<16x32xf32>
    %100 = arith.minimumf %96, %99 : vector<16x32xf32>
    %101 = math.exp %100 : vector<16x32xf32>
    %cst_34 = arith.constant 1.000000e+00 : f32
    %102 = vector.broadcast %cst_34 : f32 to vector<16x32xf32>
    %103 = arith.subf %101, %102 : vector<16x32xf32>
    %104 = arith.select %98, %96, %103 : vector<16x32xi1>, vector<16x32xf32>
    %c0_35 = arith.constant 0 : index
    %c0_36 = arith.constant 0 : index
    %105 = vector.load %arg7[%c0_35, %c0_36] : memref<32x96xf32, #tpu.memory_space<vmem>>, vector<32x96xf32>
    %c0_37 = arith.constant 0 : index
    %c0_38 = arith.constant 0 : index
    %c0_39 = arith.constant 0 : index
    %106 = vector.load %arg8[%c0_37, %c0_38, %c0_39] : memref<2x32x32xf32, #tpu.memory_space<vmem>>, vector<2x32x32xf32>
    %c0_40 = arith.constant 0 : index
    %c0_41 = arith.constant 0 : index
    %107 = vector.load %arg9[%c0_40, %c0_41] : memref<10x32xf32, #tpu.memory_space<vmem>>, vector<10x32xf32>
    %108 = arith.truncf %104 : vector<16x32xf32> to vector<16x32xbf16>
    %109 = arith.truncf %105 : vector<32x96xf32> to vector<32x96xbf16>
    %cst_42 = arith.constant dense<0.000000e+00> : vector<16x96xf32>
    %110 = tpu.matmul %108, %109, %cst_42 {dimension_numbers = #tpu.dot_dimension_numbers<[1], [0], [0], [1], [0, 0, 1, 1], [], []>} : vector<16x32xbf16>, vector<32x96xbf16>, vector<16x96xf32> -> vector<16x96xf32>
    %111 = vector.extract_strided_slice %110 {offsets = [0, 0], sizes = [16, 32], strides = [1, 1]} : vector<16x96xf32> to vector<16x32xf32>
    %112 = vector.extract_strided_slice %110 {offsets = [0, 32], sizes = [16, 32], strides = [1, 1]} : vector<16x96xf32> to vector<16x32xf32>
    %113 = vector.extract_strided_slice %110 {offsets = [0, 64], sizes = [16, 32], strides = [1, 1]} : vector<16x96xf32> to vector<16x32xf32>
    %114 = vector.extract_strided_slice %107 {offsets = [9, 0], sizes = [1, 32], strides = [1, 1]} : vector<10x32xf32> to vector<1x32xf32>
    %115 = vector.broadcast %114 : vector<1x32xf32> to vector<16x32xf32>
    %116 = arith.addf %113, %115 : vector<16x32xf32>
    %cst_43 = arith.constant 0.000000e+00 : f32
    %117 = vector.broadcast %cst_43 : f32 to vector<16x32xf32>
    %118 = arith.maximumf %116, %117 : vector<16x32xf32>
    %119 = arith.truncf %111 : vector<16x32xf32> to vector<16x32xbf16>
    %cst_44 = arith.constant dense<0.000000e+00> : vector<64x32xf32>
    %120 = tpu.matmul %13, %119, %cst_44 {dimension_numbers = #tpu.dot_dimension_numbers<[1], [0], [0], [1], [0, 0, 1, 1], [], []>} : vector<64x16xbf16>, vector<16x32xbf16>, vector<64x32xf32> -> vector<64x32xf32>
    %121 = arith.truncf %112 : vector<16x32xf32> to vector<16x32xbf16>
    %cst_45 = arith.constant dense<0.000000e+00> : vector<64x32xf32>
    %122 = tpu.matmul %7, %121, %cst_45 {dimension_numbers = #tpu.dot_dimension_numbers<[1], [0], [0], [1], [0, 0, 1, 1], [], []>} : vector<64x16xbf16>, vector<16x32xbf16>, vector<64x32xf32> -> vector<64x32xf32>
    %123 = arith.addf %120, %122 : vector<64x32xf32>
    %124 = vector.extract_strided_slice %107 {offsets = [0, 0], sizes = [1, 32], strides = [1, 1]} : vector<10x32xf32> to vector<1x32xf32>
    %125 = vector.broadcast %124 : vector<1x32xf32> to vector<64x32xf32>
    %126 = arith.addf %123, %125 : vector<64x32xf32>
    %cst_46 = arith.constant 0.000000e+00 : f32
    %127 = vector.broadcast %cst_46 : f32 to vector<64x32xf32>
    %128 = arith.maximumf %126, %127 : vector<64x32xf32>
    %129 = vector.extract_strided_slice %107 {offsets = [1, 0], sizes = [1, 32], strides = [1, 1]} : vector<10x32xf32> to vector<1x32xf32>
    %130 = vector.broadcast %129 : vector<1x32xf32> to vector<64x32xf32>
    %131 = arith.mulf %128, %130 : vector<64x32xf32>
    %132 = vector.extract_strided_slice %107 {offsets = [2, 0], sizes = [1, 32], strides = [1, 1]} : vector<10x32xf32> to vector<1x32xf32>
    %133 = vector.broadcast %132 : vector<1x32xf32> to vector<64x32xf32>
    %134 = arith.addf %131, %133 : vector<64x32xf32>
    %135 = vector.extract_strided_slice %106 {offsets = [0, 0, 0], sizes = [1, 32, 32], strides = [1, 1, 1]} : vector<2x32x32xf32> to vector<1x32x32xf32>
    %136 = vector.shape_cast %135 : vector<1x32x32xf32> to vector<32x32xf32>
    %137 = arith.truncf %134 : vector<64x32xf32> to vector<64x32xbf16>
    %138 = arith.truncf %136 : vector<32x32xf32> to vector<32x32xbf16>
    %cst_47 = arith.constant dense<0.000000e+00> : vector<64x32xf32>
    %139 = tpu.matmul %137, %138, %cst_47 {dimension_numbers = #tpu.dot_dimension_numbers<[1], [0], [0], [1], [0, 0, 1, 1], [], []>} : vector<64x32xbf16>, vector<32x32xbf16>, vector<64x32xf32> -> vector<64x32xf32>
    %140 = vector.extract_strided_slice %107 {offsets = [3, 0], sizes = [1, 32], strides = [1, 1]} : vector<10x32xf32> to vector<1x32xf32>
    %141 = vector.broadcast %140 : vector<1x32xf32> to vector<64x32xf32>
    %142 = arith.addf %139, %141 : vector<64x32xf32>
    %cst_48 = arith.constant 0.000000e+00 : f32
    %143 = vector.broadcast %cst_48 : f32 to vector<64x32xf32>
    %144 = arith.maximumf %142, %143 : vector<64x32xf32>
    %145 = vector.extract_strided_slice %107 {offsets = [4, 0], sizes = [1, 32], strides = [1, 1]} : vector<10x32xf32> to vector<1x32xf32>
    %146 = vector.broadcast %145 : vector<1x32xf32> to vector<64x32xf32>
    %147 = arith.mulf %144, %146 : vector<64x32xf32>
    %148 = vector.extract_strided_slice %107 {offsets = [5, 0], sizes = [1, 32], strides = [1, 1]} : vector<10x32xf32> to vector<1x32xf32>
    %149 = vector.broadcast %148 : vector<1x32xf32> to vector<64x32xf32>
    %150 = arith.addf %147, %149 : vector<64x32xf32>
    %151 = vector.extract_strided_slice %106 {offsets = [1, 0, 0], sizes = [1, 32, 32], strides = [1, 1, 1]} : vector<2x32x32xf32> to vector<1x32x32xf32>
    %152 = vector.shape_cast %151 : vector<1x32x32xf32> to vector<32x32xf32>
    %153 = arith.truncf %150 : vector<64x32xf32> to vector<64x32xbf16>
    %154 = arith.truncf %152 : vector<32x32xf32> to vector<32x32xbf16>
    %cst_49 = arith.constant dense<0.000000e+00> : vector<64x32xf32>
    %155 = tpu.matmul %153, %154, %cst_49 {dimension_numbers = #tpu.dot_dimension_numbers<[1], [0], [0], [1], [0, 0, 1, 1], [], []>} : vector<64x32xbf16>, vector<32x32xbf16>, vector<64x32xf32> -> vector<64x32xf32>
    %156 = vector.extract_strided_slice %107 {offsets = [6, 0], sizes = [1, 32], strides = [1, 1]} : vector<10x32xf32> to vector<1x32xf32>
    %157 = vector.broadcast %156 : vector<1x32xf32> to vector<64x32xf32>
    %158 = arith.addf %155, %157 : vector<64x32xf32>
    %cst_50 = arith.constant 0.000000e+00 : f32
    %159 = vector.broadcast %cst_50 : f32 to vector<64x32xf32>
    %160 = arith.maximumf %158, %159 : vector<64x32xf32>
    %161 = vector.extract_strided_slice %107 {offsets = [7, 0], sizes = [1, 32], strides = [1, 1]} : vector<10x32xf32> to vector<1x32xf32>
    %162 = vector.broadcast %161 : vector<1x32xf32> to vector<64x32xf32>
    %163 = arith.mulf %160, %162 : vector<64x32xf32>
    %164 = vector.extract_strided_slice %107 {offsets = [8, 0], sizes = [1, 32], strides = [1, 1]} : vector<10x32xf32> to vector<1x32xf32>
    %165 = vector.broadcast %164 : vector<1x32xf32> to vector<64x32xf32>
    %166 = arith.addf %163, %165 : vector<64x32xf32>
    %167 = arith.truncf %166 : vector<64x32xf32> to vector<64x32xbf16>
    %cst_51 = arith.constant dense<0.000000e+00> : vector<16x32xf32>
    %168 = tpu.matmul %13, %167, %cst_51 {dimension_numbers = #tpu.dot_dimension_numbers<[0], [0], [1], [1], [0, 1, 1, 1], [], []>} : vector<64x16xbf16>, vector<64x32xbf16>, vector<16x32xf32> -> vector<16x32xf32>
    %169 = vector.broadcast %27 : vector<16x1xf32> to vector<16x32xf32>
    %170 = arith.mulf %168, %169 : vector<16x32xf32>
    %171 = arith.addf %170, %118 : vector<16x32xf32>
    %c0_52 = arith.constant 0 : index
    %c0_53 = arith.constant 0 : index
    %172 = vector.load %arg10[%c0_52, %c0_53] : memref<32x96xf32, #tpu.memory_space<vmem>>, vector<32x96xf32>
    %c0_54 = arith.constant 0 : index
    %c0_55 = arith.constant 0 : index
    %c0_56 = arith.constant 0 : index
    %173 = vector.load %arg11[%c0_54, %c0_55, %c0_56] : memref<2x32x32xf32, #tpu.memory_space<vmem>>, vector<2x32x32xf32>
    %c0_57 = arith.constant 0 : index
    %c0_58 = arith.constant 0 : index
    %174 = vector.load %arg12[%c0_57, %c0_58] : memref<10x32xf32, #tpu.memory_space<vmem>>, vector<10x32xf32>
    %175 = arith.truncf %171 : vector<16x32xf32> to vector<16x32xbf16>
    %176 = arith.truncf %172 : vector<32x96xf32> to vector<32x96xbf16>
    %cst_59 = arith.constant dense<0.000000e+00> : vector<16x96xf32>
    %177 = tpu.matmul %175, %176, %cst_59 {dimension_numbers = #tpu.dot_dimension_numbers<[1], [0], [0], [1], [0, 0, 1, 1], [], []>} : vector<16x32xbf16>, vector<32x96xbf16>, vector<16x96xf32> -> vector<16x96xf32>
    %178 = vector.extract_strided_slice %177 {offsets = [0, 0], sizes = [16, 32], strides = [1, 1]} : vector<16x96xf32> to vector<16x32xf32>
    %179 = vector.extract_strided_slice %177 {offsets = [0, 32], sizes = [16, 32], strides = [1, 1]} : vector<16x96xf32> to vector<16x32xf32>
    %180 = vector.extract_strided_slice %177 {offsets = [0, 64], sizes = [16, 32], strides = [1, 1]} : vector<16x96xf32> to vector<16x32xf32>
    %181 = vector.extract_strided_slice %174 {offsets = [9, 0], sizes = [1, 32], strides = [1, 1]} : vector<10x32xf32> to vector<1x32xf32>
    %182 = vector.broadcast %181 : vector<1x32xf32> to vector<16x32xf32>
    %183 = arith.addf %180, %182 : vector<16x32xf32>
    %cst_60 = arith.constant 0.000000e+00 : f32
    %184 = vector.broadcast %cst_60 : f32 to vector<16x32xf32>
    %185 = arith.maximumf %183, %184 : vector<16x32xf32>
    %186 = arith.truncf %178 : vector<16x32xf32> to vector<16x32xbf16>
    %cst_61 = arith.constant dense<0.000000e+00> : vector<64x32xf32>
    %187 = tpu.matmul %13, %186, %cst_61 {dimension_numbers = #tpu.dot_dimension_numbers<[1], [0], [0], [1], [0, 0, 1, 1], [], []>} : vector<64x16xbf16>, vector<16x32xbf16>, vector<64x32xf32> -> vector<64x32xf32>
    %188 = arith.truncf %179 : vector<16x32xf32> to vector<16x32xbf16>
    %cst_62 = arith.constant dense<0.000000e+00> : vector<64x32xf32>
    %189 = tpu.matmul %7, %188, %cst_62 {dimension_numbers = #tpu.dot_dimension_numbers<[1], [0], [0], [1], [0, 0, 1, 1], [], []>} : vector<64x16xbf16>, vector<16x32xbf16>, vector<64x32xf32> -> vector<64x32xf32>
    %190 = arith.addf %187, %189 : vector<64x32xf32>
    %191 = vector.extract_strided_slice %174 {offsets = [0, 0], sizes = [1, 32], strides = [1, 1]} : vector<10x32xf32> to vector<1x32xf32>
    %192 = vector.broadcast %191 : vector<1x32xf32> to vector<64x32xf32>
    %193 = arith.addf %190, %192 : vector<64x32xf32>
    %cst_63 = arith.constant 0.000000e+00 : f32
    %194 = vector.broadcast %cst_63 : f32 to vector<64x32xf32>
    %195 = arith.maximumf %193, %194 : vector<64x32xf32>
    %196 = vector.extract_strided_slice %174 {offsets = [1, 0], sizes = [1, 32], strides = [1, 1]} : vector<10x32xf32> to vector<1x32xf32>
    %197 = vector.broadcast %196 : vector<1x32xf32> to vector<64x32xf32>
    %198 = arith.mulf %195, %197 : vector<64x32xf32>
    %199 = vector.extract_strided_slice %174 {offsets = [2, 0], sizes = [1, 32], strides = [1, 1]} : vector<10x32xf32> to vector<1x32xf32>
    %200 = vector.broadcast %199 : vector<1x32xf32> to vector<64x32xf32>
    %201 = arith.addf %198, %200 : vector<64x32xf32>
    %202 = vector.extract_strided_slice %173 {offsets = [0, 0, 0], sizes = [1, 32, 32], strides = [1, 1, 1]} : vector<2x32x32xf32> to vector<1x32x32xf32>
    %203 = vector.shape_cast %202 : vector<1x32x32xf32> to vector<32x32xf32>
    %204 = arith.truncf %201 : vector<64x32xf32> to vector<64x32xbf16>
    %205 = arith.truncf %203 : vector<32x32xf32> to vector<32x32xbf16>
    %cst_64 = arith.constant dense<0.000000e+00> : vector<64x32xf32>
    %206 = tpu.matmul %204, %205, %cst_64 {dimension_numbers = #tpu.dot_dimension_numbers<[1], [0], [0], [1], [0, 0, 1, 1], [], []>} : vector<64x32xbf16>, vector<32x32xbf16>, vector<64x32xf32> -> vector<64x32xf32>
    %207 = vector.extract_strided_slice %174 {offsets = [3, 0], sizes = [1, 32], strides = [1, 1]} : vector<10x32xf32> to vector<1x32xf32>
    %208 = vector.broadcast %207 : vector<1x32xf32> to vector<64x32xf32>
    %209 = arith.addf %206, %208 : vector<64x32xf32>
    %cst_65 = arith.constant 0.000000e+00 : f32
    %210 = vector.broadcast %cst_65 : f32 to vector<64x32xf32>
    %211 = arith.maximumf %209, %210 : vector<64x32xf32>
    %212 = vector.extract_strided_slice %174 {offsets = [4, 0], sizes = [1, 32], strides = [1, 1]} : vector<10x32xf32> to vector<1x32xf32>
    %213 = vector.broadcast %212 : vector<1x32xf32> to vector<64x32xf32>
    %214 = arith.mulf %211, %213 : vector<64x32xf32>
    %215 = vector.extract_strided_slice %174 {offsets = [5, 0], sizes = [1, 32], strides = [1, 1]} : vector<10x32xf32> to vector<1x32xf32>
    %216 = vector.broadcast %215 : vector<1x32xf32> to vector<64x32xf32>
    %217 = arith.addf %214, %216 : vector<64x32xf32>
    %218 = vector.extract_strided_slice %173 {offsets = [1, 0, 0], sizes = [1, 32, 32], strides = [1, 1, 1]} : vector<2x32x32xf32> to vector<1x32x32xf32>
    %219 = vector.shape_cast %218 : vector<1x32x32xf32> to vector<32x32xf32>
    %220 = arith.truncf %217 : vector<64x32xf32> to vector<64x32xbf16>
    %221 = arith.truncf %219 : vector<32x32xf32> to vector<32x32xbf16>
    %cst_66 = arith.constant dense<0.000000e+00> : vector<64x32xf32>
    %222 = tpu.matmul %220, %221, %cst_66 {dimension_numbers = #tpu.dot_dimension_numbers<[1], [0], [0], [1], [0, 0, 1, 1], [], []>} : vector<64x32xbf16>, vector<32x32xbf16>, vector<64x32xf32> -> vector<64x32xf32>
    %223 = vector.extract_strided_slice %174 {offsets = [6, 0], sizes = [1, 32], strides = [1, 1]} : vector<10x32xf32> to vector<1x32xf32>
    %224 = vector.broadcast %223 : vector<1x32xf32> to vector<64x32xf32>
    %225 = arith.addf %222, %224 : vector<64x32xf32>
    %cst_67 = arith.constant 0.000000e+00 : f32
    %226 = vector.broadcast %cst_67 : f32 to vector<64x32xf32>
    %227 = arith.maximumf %225, %226 : vector<64x32xf32>
    %228 = vector.extract_strided_slice %174 {offsets = [7, 0], sizes = [1, 32], strides = [1, 1]} : vector<10x32xf32> to vector<1x32xf32>
    %229 = vector.broadcast %228 : vector<1x32xf32> to vector<64x32xf32>
    %230 = arith.mulf %227, %229 : vector<64x32xf32>
    %231 = vector.extract_strided_slice %174 {offsets = [8, 0], sizes = [1, 32], strides = [1, 1]} : vector<10x32xf32> to vector<1x32xf32>
    %232 = vector.broadcast %231 : vector<1x32xf32> to vector<64x32xf32>
    %233 = arith.addf %230, %232 : vector<64x32xf32>
    %234 = arith.truncf %233 : vector<64x32xf32> to vector<64x32xbf16>
    %cst_68 = arith.constant dense<0.000000e+00> : vector<16x32xf32>
    %235 = tpu.matmul %13, %234, %cst_68 {dimension_numbers = #tpu.dot_dimension_numbers<[0], [0], [1], [1], [0, 1, 1, 1], [], []>} : vector<64x16xbf16>, vector<64x32xbf16>, vector<16x32xf32> -> vector<16x32xf32>
    %236 = vector.broadcast %27 : vector<16x1xf32> to vector<16x32xf32>
    %237 = arith.mulf %235, %236 : vector<16x32xf32>
    %238 = arith.addf %237, %185 : vector<16x32xf32>
    %239 = arith.addf %104, %171 : vector<16x32xf32>
    %240 = arith.addf %239, %238 : vector<16x32xf32>
    %241 = arith.truncf %240 : vector<16x32xf32> to vector<16x32xbf16>
    %cst_69 = arith.constant dense<0.000000e+00> : vector<2x32xf32>
    %242 = tpu.matmul %20, %241, %cst_69 {dimension_numbers = #tpu.dot_dimension_numbers<[0], [0], [1], [1], [0, 1, 1, 1], [], []>} : vector<16x2xbf16>, vector<16x32xbf16>, vector<2x32xf32> -> vector<2x32xf32>
    %243 = vector.broadcast %30 : vector<2x1xf32> to vector<2x32xf32>
    %244 = arith.mulf %242, %243 : vector<2x32xf32>
    %c0_70 = arith.constant 0 : index
    %c0_71 = arith.constant 0 : index
    %c0_72 = arith.constant 0 : index
    %245 = vector.load %arg13[%c0_70, %c0_71, %c0_72] : memref<2x32x32xf32, #tpu.memory_space<vmem>>, vector<2x32x32xf32>
    %c0_73 = arith.constant 0 : index
    %c0_74 = arith.constant 0 : index
    %246 = vector.load %arg14[%c0_73, %c0_74] : memref<4x32xf32, #tpu.memory_space<vmem>>, vector<4x32xf32>
    %247 = vector.extract_strided_slice %246 {offsets = [0, 0], sizes = [1, 32], strides = [1, 1]} : vector<4x32xf32> to vector<1x32xf32>
    %248 = vector.broadcast %247 : vector<1x32xf32> to vector<2x32xf32>
    %249 = arith.mulf %244, %248 : vector<2x32xf32>
    %250 = vector.extract_strided_slice %246 {offsets = [1, 0], sizes = [1, 32], strides = [1, 1]} : vector<4x32xf32> to vector<1x32xf32>
    %251 = vector.broadcast %250 : vector<1x32xf32> to vector<2x32xf32>
    %252 = arith.addf %249, %251 : vector<2x32xf32>
    %253 = vector.extract_strided_slice %245 {offsets = [0, 0, 0], sizes = [1, 32, 32], strides = [1, 1, 1]} : vector<2x32x32xf32> to vector<1x32x32xf32>
    %254 = vector.shape_cast %253 : vector<1x32x32xf32> to vector<32x32xf32>
    %255 = arith.truncf %252 : vector<2x32xf32> to vector<2x32xbf16>
    %256 = arith.truncf %254 : vector<32x32xf32> to vector<32x32xbf16>
    %cst_75 = arith.constant dense<0.000000e+00> : vector<2x32xf32>
    %257 = tpu.matmul %255, %256, %cst_75 {dimension_numbers = #tpu.dot_dimension_numbers<[1], [0], [0], [1], [0, 0, 1, 1], [], []>} : vector<2x32xbf16>, vector<32x32xbf16>, vector<2x32xf32> -> vector<2x32xf32>
    %258 = vector.extract_strided_slice %246 {offsets = [2, 0], sizes = [1, 32], strides = [1, 1]} : vector<4x32xf32> to vector<1x32xf32>
    %259 = vector.broadcast %258 : vector<1x32xf32> to vector<2x32xf32>
    %260 = arith.addf %257, %259 : vector<2x32xf32>
    %cst_76 = arith.constant 0.000000e+00 : f32
    %261 = vector.broadcast %cst_76 : f32 to vector<2x32xf32>
    %262 = arith.cmpf ogt, %260, %261 : vector<2x32xf32>
    %cst_77 = arith.constant 0.000000e+00 : f32
    %263 = vector.broadcast %cst_77 : f32 to vector<2x32xf32>
    %264 = arith.minimumf %260, %263 : vector<2x32xf32>
    %265 = math.exp %264 : vector<2x32xf32>
    %cst_78 = arith.constant 1.000000e+00 : f32
    %266 = vector.broadcast %cst_78 : f32 to vector<2x32xf32>
    %267 = arith.subf %265, %266 : vector<2x32xf32>
    %cst_79 = arith.constant 1.67326319 : f32
    %268 = vector.broadcast %cst_79 : f32 to vector<2x32xf32>
    %269 = arith.mulf %268, %267 : vector<2x32xf32>
    %270 = arith.select %262, %260, %269 : vector<2x32xi1>, vector<2x32xf32>
    %cst_80 = arith.constant 1.05070102 : f32
    %271 = vector.broadcast %cst_80 : f32 to vector<2x32xf32>
    %272 = arith.mulf %271, %270 : vector<2x32xf32>
    %273 = vector.extract_strided_slice %245 {offsets = [1, 0, 0], sizes = [1, 32, 32], strides = [1, 1, 1]} : vector<2x32x32xf32> to vector<1x32x32xf32>
    %274 = vector.shape_cast %273 : vector<1x32x32xf32> to vector<32x32xf32>
    %275 = arith.truncf %272 : vector<2x32xf32> to vector<2x32xbf16>
    %276 = arith.truncf %274 : vector<32x32xf32> to vector<32x32xbf16>
    %cst_81 = arith.constant dense<0.000000e+00> : vector<2x32xf32>
    %277 = tpu.matmul %275, %276, %cst_81 {dimension_numbers = #tpu.dot_dimension_numbers<[1], [0], [0], [1], [0, 0, 1, 1], [], []>} : vector<2x32xbf16>, vector<32x32xbf16>, vector<2x32xf32> -> vector<2x32xf32>
    %278 = vector.extract_strided_slice %246 {offsets = [3, 0], sizes = [1, 32], strides = [1, 1]} : vector<4x32xf32> to vector<1x32xf32>
    %279 = vector.broadcast %278 : vector<1x32xf32> to vector<2x32xf32>
    %280 = arith.addf %277, %279 : vector<2x32xf32>
    %cst_82 = arith.constant 0.000000e+00 : f32
    %281 = vector.broadcast %cst_82 : f32 to vector<2x32xf32>
    %282 = arith.cmpf ogt, %280, %281 : vector<2x32xf32>
    %cst_83 = arith.constant 0.000000e+00 : f32
    %283 = vector.broadcast %cst_83 : f32 to vector<2x32xf32>
    %284 = arith.minimumf %280, %283 : vector<2x32xf32>
    %285 = math.exp %284 : vector<2x32xf32>
    %cst_84 = arith.constant 1.000000e+00 : f32
    %286 = vector.broadcast %cst_84 : f32 to vector<2x32xf32>
    %287 = arith.subf %285, %286 : vector<2x32xf32>
    %cst_85 = arith.constant 1.67326319 : f32
    %288 = vector.broadcast %cst_85 : f32 to vector<2x32xf32>
    %289 = arith.mulf %288, %287 : vector<2x32xf32>
    %290 = arith.select %282, %280, %289 : vector<2x32xi1>, vector<2x32xf32>
    %cst_86 = arith.constant 1.05070102 : f32
    %291 = vector.broadcast %cst_86 : f32 to vector<2x32xf32>
    %292 = arith.mulf %291, %290 : vector<2x32xf32>
    %c0_87 = arith.constant 0 : index
    %c0_88 = arith.constant 0 : index
    %293 = vector.load %arg15[%c0_87, %c0_88] : memref<32x3xf32, #tpu.memory_space<vmem>>, vector<32x3xf32>
    %294 = arith.truncf %292 : vector<2x32xf32> to vector<2x32xbf16>
    %295 = arith.truncf %293 : vector<32x3xf32> to vector<32x3xbf16>
    %cst_89 = arith.constant dense<0.000000e+00> : vector<2x3xf32>
    %296 = tpu.matmul %294, %295, %cst_89 {dimension_numbers = #tpu.dot_dimension_numbers<[1], [0], [0], [1], [0, 0, 1, 1], [], []>} : vector<2x32xbf16>, vector<32x3xbf16>, vector<2x3xf32> -> vector<2x3xf32>
    %c0_90 = arith.constant 0 : index
    %c0_91 = arith.constant 0 : index
    %297 = vector.load %arg16[%c0_90, %c0_91] : memref<1x3xf32, #tpu.memory_space<vmem>>, vector<1x3xf32>
    %298 = vector.broadcast %297 : vector<1x3xf32> to vector<2x3xf32>
    %299 = arith.addf %296, %298 : vector<2x3xf32>
    %cst_92 = arith.constant dense<0xFF800000> : vector<2xf32>
    %300 = vector.multi_reduction <maximumf>, %299, %cst_92 [1] : vector<2x3xf32> to vector<2xf32>
    %301 = vector.shape_cast %300 : vector<2xf32> to vector<2x1xf32>
    %302 = vector.broadcast %301 : vector<2x1xf32> to vector<2x3xf32>
    %303 = arith.subf %299, %302 : vector<2x3xf32>
    %304 = math.exp %303 : vector<2x3xf32>
    %cst_93 = arith.constant dense<0.000000e+00> : vector<2xf32>
    %305 = vector.multi_reduction <add>, %304, %cst_93 [1] : vector<2x3xf32> to vector<2xf32>
    %306 = vector.shape_cast %305 : vector<2xf32> to vector<2x1xf32>
    %307 = math.log %306 : vector<2x1xf32>
    %308 = vector.broadcast %307 : vector<2x1xf32> to vector<2x3xf32>
    %309 = arith.subf %303, %308 : vector<2x3xf32>
    %c0_94 = arith.constant 0 : index
    %c0_95 = arith.constant 0 : index
    %310 = vector.load %arg17[%c0_94, %c0_95] : memref<2x3xf32, #tpu.memory_space<vmem>>, vector<2x3xf32>
    tpu.vector_store %arg17[%c0_94, %c0_95], %309 {strides = array<i32>} : memref<2x3xf32, #tpu.memory_space<vmem>>, vector<2x3xf32>,
    return
  }
}

</mosaic_0001>

<bundles_post_ra>
// kernel: particlenet_forward.1
= control target key start
LH: loop header
LB: loop body
LE: loop exit
PB: predicated region body
PF: predicated region fallthrough
CT: control target
= control target key end

     0   :  { %s3715_s0 = inlined_call_operand.vmem [shape: f32[16,4], index: 0, kind: input, shape index: {}]   ;;  %s3716_s1 = inlined_call_operand.vmem [shape: s32[64,1], index: 1, kind: input, shape index: {}]   ;;  %s3717_s2 = inlined_call_operand.vmem [shape: s32[64,1], index: 2, kind: input, shape index: {}]   ;;  %s3718_s3 = inlined_call_operand.vmem [shape: s32[16,1], index: 3, kind: input, shape index: {}]   ;;  %s3719_s4 = inlined_call_operand.vmem [shape: f32[3,4], index: 4, kind: input, shape index: {}]   ;;  %s3720_s5 = inlined_call_operand.vmem [shape: f32[4,128], index: 5, kind: input, shape index: {}]   ;;  %s3721_s6 = inlined_call_operand.vmem [shape: f32[1,128], index: 6, kind: input, shape index: {}]   ;;  %s3722_s7 = inlined_call_operand.hbm [shape: f32[32,96], index: 7, kind: input, shape index: {}]   ;;  %s3723_s8 = inlined_call_operand.vmem [shape: f32[2,32,32], index: 8, kind: input, shape index: {}]   ;;  %s3724_s9 = inlined_call_operand.vmem [shape: f32[10,32], index: 9, kind: input, shape index: {}]   ;;  %s3725_s10 = inlined_call_operand.hbm [shape: f32[32,96], index: 10, kind: input, shape index: {}]   ;;  %s3726_s11 = inlined_call_operand.vmem [shape: f32[2,32,32], index: 11, kind: input, shape index: {}]   ;;  %s3727_s12 = inlined_call_operand.hbm [shape: f32[10,32], index: 12, kind: input, shape index: {}]   ;;  %s3728_s13 = inlined_call_operand.vmem [shape: f32[2,32,32], index: 13, kind: input, shape index: {}]   ;;  %s3729_s14 = inlined_call_operand.vmem [shape: f32[4,32], index: 14, kind: input, shape index: {}]   ;;  %s3730_s15 = inlined_call_operand.vmem [shape: f32[32,3], index: 15, kind: input, shape index: {}]   ;;  %s3731_s16 = inlined_call_operand.hbm [shape: f32[1,3], index: 16, kind: input, shape index: {}]   ;;  %s3732_s17 = inlined_call_operand.hbm [shape: f32[2,3], index: 17, kind: output, shape index: {}]  }
   0x1   :  { %3735 = sst [smem:[#allocation15_spill]] %s3715_s0 }
   0x2   :  { %3736 = sst [smem:[#allocation16_spill]] %s3716_s1 }
   0x3   :  { %22 = vsyncpa [#allocation3], 0 }
   0x4   :  { %23 = vsyncpa [#allocation6], 0 }
   0x5   :  { %24 = vsyncpa [#allocation9], 0 }
   0x6   :  { %25 = vsyncpa [#allocation4], 0  ;;  %s3014_s24 = smov [#allocation5]   ;;  %s3015_s26 = smov [#allocation2]  }
   0x7   :  { %s61_s25 = sshll.u32 %s3014_s24, 4  ;;  %s45_s27 = sshll.u32 %s3015_s26, 4  ;;  %s62_s25 = int_to_ptr.vmem [resolvable:$true] %s61_s25  ;;  %s46_s27 = int_to_ptr.vmem [resolvable:$true] %s45_s27 }
   0x8   :  { %s2914_s28 = scalar_lea.vmem %s62_s25, 512  ;;  %p2919_p1 = scmp.lt.s32.totalorder %s62_s25, %s62_s25 }
   0x9   :  { %p2915_p0 = scmp.ne.s32.totalorder %s62_s25, %s2914_s28  ;;  %p2920_p2 = scmp.lt.s32.totalorder %s2914_s28, %s2914_s28 }
   0xb   :  { %p2921_p3 = por %p2920_p2, %p2919_p1 }
   0xd   :  { %p2922_p4 = pnand %p2921_p3, %p2915_p0 }
   0xf   :  { %2925 = shalt.err (!%p2922_p4)
}
  0x10   :  { %s3016_s29 = smov 128   ;;  %s3017_s0 = smov 8  }
  0x11   :  { %67 = dma.hbm_to_vmem [thread:$0]  %s3725_s10, 512, %s62_s25, [#allocation6], %s3016_s29, %s3016_s29, %s3017_s0  }
  0x12   :  { %s2934_s19 = scalar_lea.vmem %s46_s27, 512  ;;  %p2939_p6 = scmp.lt.s32.totalorder %s46_s27, %s46_s27 }
  0x13   :  { %p2935_p5 = scmp.ne.s32.totalorder %s46_s27, %s2934_s19  ;;  %p2940_p7 = scmp.lt.s32.totalorder %s2934_s19, %s2934_s19 }
  0x15   :  { %p2941_p8 = por %p2940_p7, %p2939_p6 }
  0x17   :  { %p2942_p9 = pnand %p2941_p8, %p2935_p5 }
  0x19   :  { %2945 = shalt.err (!%p2942_p9)
}
  0x1a   :  { %51 = dma.hbm_to_vmem [thread:$0]  %s3722_s7, 512, %s46_s27, [#allocation3], %s3016_s29, %s3016_s29, %s3017_s0  }
  0x1b   :  { %s3018_s21 = smov [#allocation7]   ;;  %s3019_s23 = smov [#allocation8]  }
  0x1c   :  { %s75_s22 = sshll.u32 %s3018_s21, 4  ;;  %s94_s24 = sshll.u32 %s3019_s23, 4  ;;  %s76_s22 = int_to_ptr.vmem [resolvable:$true] %s75_s22  ;;  %s95_s24 = int_to_ptr.vmem [resolvable:$true] %s94_s24 }
  0x1d   :  { %s2954_s26 = scalar_lea.vmem %s76_s22, 256  ;;  %p2959_p11 = scmp.lt.s32.totalorder %s76_s22, %s76_s22 }
  0x1e   :  { %p2955_p10 = scmp.ne.s32.totalorder %s76_s22, %s2954_s26  ;;  %p2960_p12 = scmp.lt.s32.totalorder %s2954_s26, %s2954_s26 }
  0x20   :  { %p2961_p13 = por %p2960_p12, %p2959_p11 }
  0x22   :  { %p2962_p0 = pnand %p2961_p13, %p2955_p10 }
  0x24   :  { %2965 = shalt.err (!%p2962_p0)
}
  0x25   :  { %81 = dma.hbm_to_vmem [thread:$0]  %s3727_s12, 256, %s76_s22, [#allocation6], %s3016_s29, %s3016_s29, %s3017_s0  }
  0x26   :  { %s2974_s28 = scalar_lea.vmem %s95_s24, 16  ;;  %s2978_s7 = scalar_lea.vmem %s95_s24, 32 }
  0x27   :  { %p2975_p1 = scmp.ne.s32.totalorder %s95_s24, %s2974_s28  ;;  %p2979_p2 = scmp.lt.s32.totalorder %s95_s24, %s95_s24 }
  0x28   :  { %p2980_p3 = scmp.lt.s32.totalorder %s2978_s7, %s2974_s28 }
  0x2a   :  { %p2981_p4 = por %p2980_p3, %p2979_p2 }
  0x2c   :  { %p2982_p5 = pnand %p2981_p4, %p2975_p1 }
  0x2e   :  { %2985 = shalt.err (!%p2982_p5)
}
  0x2f   :  { %97 = dma.hbm_to_vmem [thread:$0]  %s3731_s16, 16, %s95_s24, [#allocation9]  }
  0x30   :  { %3006 = dma.done.wait [#allocation3], 512  }
  0x31   :  { %3007 = vsyncadd [#allocation3], 4294966784 }
  0x32   :  { %3008 = dma.done.wait [#allocation6], 768  }
  0x33   :  { %3009 = vsyncadd [#allocation6], 4294966528 }
  0x34   :  { %3010 = dma.done.wait [#allocation9], 16  }
  0x35   :  { %3011 = vsyncadd [#allocation9], 4294967280  ;;  %v3020_v0 = vmov 0   ;;  %v3021_v1 = vmov 0.0   ;;  %v236_v2 = vld [vmem:[%s3718_s3] sm:$0xff]  ;;  %v237_v3 = vld [vmem:[%s3718_s3 + $0x8] sm:$0xff]  ;;  %v114_v9 = vlaneseq }
  0x36   :  { %2862 = vset.pattern.permute.xlu0 %v3020_v0  ;;  %2611 = vmatprep.subr.bf16.mxu1 %v3021_v1  ;;  %v176_v4 = vld [vmem:[%s3717_s2] sm:$0xff]  ;;  %v178_v5 = vld [vmem:[%s3717_s2 + $0x10] sm:$0xff]  ;;  %v3022_v8 = vmov 1065369472   ;;  %vm3023_vm0 = vmmov 0   ;;  %s3737_s10 = sld [smem:[#allocation15_spill]] }
  0x37   :  { %2599 = vmatprep.subr.bf16.mxu0 %v3021_v1  ;;  %239 = vperm.xlu0 %2862, %v236_v2   ;;  %v180_v6 = vld [vmem:[%s3717_s2 + $0x20] sm:$0xff]  ;;  %v182_v7 = vld [vmem:[%s3717_s2 + $0x30] sm:$0xff]  ;;  %v3159_v10 = vand.u32 127, %v114_v9  ;;  %vm328_vm3 = vcmask 130048   ;;  %v177_v30 = vld [vmem:[%s3717_s2 + $0x8] sm:$0xff]  ;;  %s3738_s20 = sld [smem:[#allocation16_spill]] }
  0x38   :  { %2612 = vmatpush3.bf16.msra.mxu1 %v3022_v8  ;;  %2613 = vmatprep.mubr.msk.bf16.mxu1 %vm3023_vm0, %v3021_v1  ;;  %v179_v31 = vld [vmem:[%s3717_s2 + $0x18] sm:$0xff]  ;;  %v181_v32 = vld [vmem:[%s3717_s2 + $0x28] sm:$0xff]  ;;  %vm431_vm4 = vcmask 1040384   ;;  %vm427_vm7 = vcmask 15360   ;;  %vm267_vm14 = vcmask 523264   ;;  %vm603_vm15 = vcmask 1041408  }
  0x39   :  { %2617 = vmatprep.subr.bf16.mxu1 %v3021_v1  ;;  %2600 = vmatpush3.bf16.msra.mxu0 %v3022_v8  ;;  %v183_v33 = vld [vmem:[%s3717_s2 + $0x38] sm:$0xff]  ;;  %s3024_s16 = smov 64  }
  0x3a   :  { %2601 = vmatprep.subr.bf16.mxu0 %v3021_v1  ;;  %2607 = vmatprep.mubr.msk.bf16.mxu0 %vm3023_vm0, %v3021_v1 }
  0x3b   :  { %242 = vperm.xlu0 %2862, %v237_v3   ;;  %v3268_v3 = vshrl.u32 %v114_v9, 7 }
  0x3c   :  { %v3171_v16 = vld [vmem:[%s3737_s10] sm:$0xff]  ;;  %v3176_v17 = vld [vmem:[%s3737_s10 + $0x8] sm:$0xff] }
  0x3d   :  { %2602 = vmatpush3.bf16.msra.mxu0 %v3022_v8  ;;  %v379_v18 = vpack.c.bf16 %v3176_v17, %v3171_v16  ;;  %v116_v34 = vld [vmem:[%s3738_s20] sm:$0xff]  ;;  %v117_v35 = vld [vmem:[%s3738_s20 + $0x8] sm:$0xff]  ;;  %v118_v36 = vld [vmem:[%s3738_s20 + $0x10] sm:$0xff] }
  0x3e   :  { %2603 = vmatprep.subr.bf16.mxu0 %v3021_v1  ;;  %v119_v37 = vld [vmem:[%s3738_s20 + $0x18] sm:$0xff]  ;;  %v120_v38 = vld [vmem:[%s3738_s20 + $0x20] sm:$0xff]  ;;  %v121_v39 = vld [vmem:[%s3738_s20 + $0x28] sm:$0xff] }
  0x3f   :  { %185 = vperm.xlu0 %2862, %v176_v4   ;;  %v122_v40 = vld [vmem:[%s3738_s20 + $0x30] sm:$0xff]  ;;  %v3271_v4 = vsub.s32 2, %v3268_v3 }
  0x41   :  { %2604 = vmatpush3.bf16.msra.mxu0 %v3022_v8 }
  0x42   :  { %2605 = vmatprep.subr.bf16.mxu0 %v3021_v1 }
  0x43   :  { %191 = vperm.xlu0 %2862, %v178_v5   ;;  %v378_v5 = vld [vmem:[%s3719_s4] sm:$0x7] }
  0x45   :  { %2606 = vmatpush3.bf16.msra.mxu0 %v3022_v8 }
  0x46   :  { %2629 = vmatprep.subr.bf16.mxu0 %v3021_v1 }
  0x47   :  { %197 = vperm.xlu0 %2862, %v180_v6   ;;  %v479_v6 = vrot.slane %v378_v5, %v3271_v4 }
  0x4b   :  { %203 = vperm.xlu0 %2862, %v182_v7  }
  0xb2   :  { %v240_v11 = vpop.permute.xlu0 %239 }
  0xb3   :  { %vm244_vm1 = vcmp.eq.s32.totalorder %v3159_v10, %v240_v11 }
  0xb4   :  { %v2426_v13 = vsel %vm244_vm1, 1.0, %v3021_v1 }
  0xb6   :  { %v243_v12 = vpop.permute.xlu0 %242 }
  0xb7   :  { %vm245_vm2 = vcmp.eq.s32.totalorder %v3159_v10, %v243_v12 }
  0xb8   :  { %v2427_v14 = vsel %vm245_vm2, 1.0, %v3021_v1 }
  0xb9   :  { %v3165_v15 = vpack.c.bf16 %v2427_v14, %v2426_v13 }
  0xba   :  { %v186_v41 = vpop.permute.xlu0 %185 }
  0xbb   :  { %312 = vxpose.xlu1.c.b16.start.end [1/1] (short) (narrow) %v3165_v15, 16  ;;  %vm208_vm5 = vcmp.eq.s32.totalorder %v3159_v10, %v186_v41  ;;  %v3298_v41 = vsub.s32 0, %v3268_v3 }
  0xbc   :  { %v2418_v48 = vsel %vm208_vm5, 1.0, %v3021_v1 }
  0xbe   :  { %v192_v42 = vpop.permute.xlu0 %191 }
  0xbf   :  { %2863 = vset.pattern.permute.xlu1 %v3020_v0  ;;  %vm210_vm8 = vcmp.eq.s32.totalorder %v3159_v10, %v192_v42 }
  0xc0   :  { %v2420_v53 = vsel %vm210_vm8, 1.0, %v3021_v1 }
  0xc2   :  { %v198_v49 = vpop.permute.xlu0 %197 }
  0xc3   :  { %vm212_vm10 = vcmp.eq.s32.totalorder %v3159_v10, %v198_v49 }
  0xc4   :  { %v2422_v58 = vsel %vm212_vm10, 1.0, %v3021_v1 }
  0xc6   :  { %v204_v56 = vpop.permute.xlu0 %203 }
  0xc7   :  { %vm214_vm12 = vcmp.eq.s32.totalorder %v3159_v10, %v204_v56 }
  0xc8   :  { %v2424_v62 = vsel %vm214_vm12, 1.0, %v3021_v1 }
 0x11d   :  { %v3180_v19 = vpop.trf.xlu1 }
 0x11e   :  { %2614 = vmatmul.mubr.msk.bf16.vlgmr.msra.gmra.mxu1 %vm328_vm3, %v3180_v19 }
 0x11f   :  { %2618 = vmatpush3.bf16.msra.mxu1 %v379_v18  ;;  %2619 = vmatprep.mubr.msk.bf16.mxu1 %vm3023_vm0, %v3021_v1 }
 0x120   :  { %2623 = vmatprep.subr.bf16.mxu1 %v3021_v1 }
 0x126   :  { %2620 = vmatmul.mubr.msk.bf16.vlgmr.msra.gmra.mxu1 %vm328_vm3, %v3180_v19 }
 0x127   :  { %2625 = vmatprep.mubr.msk.bf16.mxu1 %vm3023_vm0, %v3021_v1 }
 0x1de   :  { %v366_v20 = vpop.f32.mrf.mxu1 }
 0x1df   :  { %v376_v21 = vmax.f32 %v366_v20, 1.0 }
 0x1e0   :  { %v2615_v22 = vpop.f32.mrf.mxu1 }
 0x1e1   :  { %2864 = vrcp.f32 %v376_v21 }
 0x1e2   :  { %v369_v23 = vpop.f32.mrf.mxu1 }
 0x1e4   :  { %v2616_v24 = vpop.f32.mrf.mxu1 }
 0x1e6   :  { %v414_v25 = vpop.f32.mrf.mxu1 }
 0x1e8   :  { %v2621_v26 = vpop.f32.mrf.mxu1 }
 0x1ea   :  { %v417_v27 = vpop.f32.mrf.mxu1 }
 0x1ec   :  { %v2622_v28 = vpop.f32.mrf.mxu1 }
 0x1ee   :  { %v2865_v29 = vpop.eup %2864 }
 0x1ef   :  { %422 = vperm.xlu1 %2863, %v2865_v29  }
 0x1f3   :  { %188 = vperm.xlu1 %2863, %v177_v30  }
 0x1f7   :  { %194 = vperm.xlu1 %2863, %v179_v31  }
 0x1fb   :  { %200 = vperm.xlu1 %2863, %v181_v32   ;;  %v589_v32 = vld [vmem:[%s3720_s5] sm:$0xf] }
 0x1ff   :  { %206 = vperm.xlu1 %2863, %v183_v33   ;;  %v591_v33 = vpack.c.bf16 %v589_v32, %v589_v32 }
 0x203   :  { %125 = vperm.xlu1 %2863, %v116_v34   ;;  %v605_v34 = vsel %vm603_vm15, %v591_v33, 0 }
 0x207   :  { %128 = vperm.xlu1 %2863, %v117_v35  }
 0x20b   :  { %131 = vperm.xlu1 %2863, %v118_v36  }
 0x20f   :  { %134 = vperm.xlu1 %2863, %v119_v37  }
 0x213   :  { %137 = vperm.xlu1 %2863, %v120_v38  }
 0x217   :  { %140 = vperm.xlu1 %2863, %v121_v39  }
 0x21b   :  { %143 = vperm.xlu1 %2863, %v122_v40  }
 0x26a   :  { %v3224_v43 = vpop.permute.xlu1 %422 }
 0x26b   :  { %v425_v44 = vmul.f32 %v3224_v43, %v414_v25 }
 0x26d   :  { %v426_v45 = vpack.c.bf16 %v425_v44, %v425_v44  ;;  %v580_v44 = vrot.slane %v378_v5, %v3298_v41 }
 0x26e   :  { %v189_v46 = vpop.permute.xlu1 %188 }
 0x26f   :  { %vm209_vm6 = vcmp.eq.s32.totalorder %v3159_v10, %v189_v46  ;;  %v433_v47 = vsel %vm431_vm4, %v426_v45, 0  ;;  %v3302_v45 = vsub.s32 1, %v3268_v3 }
 0x270   :  { %v2419_v50 = vsel %vm209_vm6, 1.0, %v3021_v1  ;;  %2624 = vmatpush3.bf16.msra.mxu1 %v433_v47 }
 0x271   :  { %v3233_v51 = vpack.c.bf16 %v2419_v50, %v2418_v48  ;;  %2635 = vmatprep.subr.bf16.mxu1 %v3021_v1  ;;  %v586_v49 = vrot.slane %v378_v5, %v3302_v45 }
 0x272   :  { %v195_v52 = vpop.permute.xlu1 %194 }
 0x273   :  { %vm211_vm9 = vcmp.eq.s32.totalorder %v3159_v10, %v195_v52  ;;  %251 = vxpose.xlu0.c.b16.start [1/4] (short) (narrow) %v3233_v51, 16  ;;  %2626 = vmatmul.mubr.msk.bf16.vlgmr.msra.gmra.mxu1 %vm427_vm7, %v3165_v15 }
 0x274   :  { %v2421_v54 = vsel %vm211_vm9, 1.0, %v3021_v1  ;;  %2637 = vmatprep.mubr.msk.bf16.mxu1 %vm3023_vm0, %v3021_v1 }
 0x275   :  { %v3245_v55 = vpack.c.bf16 %v2421_v54, %v2420_v53 }
 0x276   :  { %v201_v57 = vpop.permute.xlu1 %200 }
 0x277   :  { %vm213_vm11 = vcmp.eq.s32.totalorder %v3159_v10, %v201_v57  ;;  %252 = vxpose.xlu0.c.b16.cont [2/4] (short) (narrow) %v3245_v55, 16 }
 0x278   :  { %v2423_v59 = vsel %vm213_vm11, 1.0, %v3021_v1  ;;  %vm815_vm11 = vcmask 261120  }
 0x279   :  { %v3252_v60 = vpack.c.bf16 %v2423_v59, %v2422_v58 }
 0x27a   :  { %v207_v61 = vpop.permute.xlu1 %206 }
 0x27b   :  { %vm215_vm13 = vcmp.eq.s32.totalorder %v3159_v10, %v207_v61  ;;  %253 = vxpose.xlu0.c.b16.cont [3/4] (short) (narrow) %v3252_v60, 16 }
 0x27c   :  { %v2425_v63 = vsel %vm215_vm13, 1.0, %v3021_v1 }
 0x27d   :  { %v3258_v0 = vpack.c.bf16 %v2425_v63, %v2424_v62  ;;  %v2434_v63 = vld [vmem:[%s3721_s6] ss:$0 sm:$0xff]  ;;  %s3025_s6 = smov 96  }
 0x27f   :  { %254 = vxpose.xlu0.c.b16.end [4/4] (short) (narrow) %v3258_v0, 16 }
 0x2d5   :  { %v3261_v2 = vpop.trf.xlu0 }
 0x2d6   :  { %2608 = vmatmul.mubr.msk.bf16.vlgmr.msra.gmra.mxu0 %vm267_vm14, %v3261_v2 }
 0x2d7   :  { %2631 = vmatprep.mubr.msk.bf16.mxu0 %vm3023_vm0, %v3021_v1 }
 0x333   :  { %v469_v7 = vpop.f32.mrf.mxu1 }
 0x334   :  { %v480_v8 = vmul.f32 %v479_v6, %v469_v7 }
 0x335   :  { %v2627_v11 = vpop.f32.mrf.mxu1 }
 0x336   :  { %v482_v13 = vsub.f32 %v3171_v16, %v480_v8 }
 0x337   :  { %v472_v12 = vpop.f32.mrf.mxu1 }
 0x338   :  { %v481_v14 = vmul.f32 %v479_v6, %v472_v12  ;;  %v484_v20 = vmul.f32 %v482_v13, %v482_v13 }
 0x339   :  { %v2628_v18 = vpop.f32.mrf.mxu1 }
 0x33a   :  { %v483_v9 = vsub.f32 %v3176_v17, %v481_v14 }
 0x33c   :  { %v485_v21 = vmul.f32 %v483_v9, %v483_v9 }
 0x33e   :  { %v486_v22 = vpack.c.bf16 %v485_v21, %v484_v20 }
 0x340   :  { %2630 = vmatpush3.bf16.msra.mxu0 %v486_v22 }
 0x341   :  { %2641 = vmatprep.subr.bf16.mxu0 %v3021_v1 }
 0x343   :  { %2632 = vmatmul.mubr.msk.bf16.vlgmr.msra.gmra.mxu0 %vm328_vm3, %v3180_v19 }
 0x344   :  { %2643 = vmatprep.mubr.msk.bf16.mxu0 %vm3023_vm0, %v3021_v1  ;;  %2642 = vmatpush3.bf16.msra.mxu0 %v605_v34 }
 0x396   :  { %v3284_v23 = vpop.f32.mrf.mxu0 }
 0x398   :  { %v2609_v24 = vpop.f32.mrf.mxu0 }
 0x39a   :  { %v3286_v16 = vpop.f32.mrf.mxu0 }
 0x39c   :  { %v2610_v25 = vpop.f32.mrf.mxu0 }
 0x403   :  { %v521_v26 = vpop.f32.mrf.mxu0 }
 0x404   :  { %v527_v17 = vmul.f32 %v521_v26, %v3224_v43 }
 0x405   :  { %v2633_v27 = vpop.f32.mrf.mxu0 }
 0x406   :  { %v528_v28 = vpack.c.bf16 %v527_v17, %v527_v17 }
 0x407   :  { %v524_v29 = vpop.f32.mrf.mxu0 }
 0x408   :  { %v530_v30 = vsel %vm431_vm4, %v528_v28, 0  ;;  %vm599_vm4 = vcmask 31744  }
 0x409   :  { %v2634_v31 = vpop.f32.mrf.mxu0  ;;  %2636 = vmatpush3.bf16.msra.mxu1 %v530_v30 }
 0x40c   :  { %2638 = vmatmul.mubr.msk.bf16.vlgmr.msra.gmra.mxu1 %vm427_vm7, %v3165_v15  ;;  %v126_v15 = vpop.permute.xlu1 %125 }
 0x40d   :  { %2649 = vmatprep.mubr.msk.bf16.mxu1 %vm328_vm3, %v3233_v51  ;;  %vm148_vm2 = vcmp.eq.s32.totalorder %v3159_v10, %v126_v15 }
 0x40e   :  { %v2410_v58 = vsel %vm148_vm2, 1.0, %v3021_v1 }
 0x410   :  { %v129_v47 = vpop.permute.xlu1 %128 }
 0x411   :  { %vm149_vm1 = vcmp.eq.s32.totalorder %v3159_v10, %v129_v47 }
 0x412   :  { %v2411_v54 = vsel %vm149_vm1, 1.0, %v3021_v1 }
 0x413   :  { %v3309_v61 = vpack.c.bf16 %v2411_v54, %v2410_v58 }
 0x414   :  { %v132_v14 = vpop.permute.xlu1 %131 }
 0x415   :  { %vm150_vm7 = vcmp.eq.s32.totalorder %v3159_v10, %v132_v14 }
 0x416   :  { %v2412_v26 = vsel %vm150_vm7, 1.0, %v3021_v1 }
 0x418   :  { %v135_v18 = vpop.permute.xlu1 %134 }
 0x419   :  { %vm151_vm5 = vcmp.eq.s32.totalorder %v3159_v10, %v135_v18 }
 0x41a   :  { %v2413_v22 = vsel %vm151_vm5, 1.0, %v3021_v1 }
 0x41b   :  { %v3342_v17 = vpack.c.bf16 %v2413_v22, %v2412_v26 }
 0x4cc   :  { %v566_v35 = vpop.f32.mrf.mxu1 }
 0x4cd   :  { %v567_v36 = vadd.f32 1e-05, %v566_v35 }
 0x4ce   :  { %v2639_v37 = vpop.f32.mrf.mxu1 }
 0x4cf   :  { %2866 = vrsqrt.f32 %v567_v36 }
 0x4d0   :  { %v569_v38 = vpop.f32.mrf.mxu1 }
 0x4d1   :  { %v570_v39 = vadd.f32 1e-05, %v569_v38 }
 0x4d2   :  { %v2640_v40 = vpop.f32.mrf.mxu1 }
 0x4d3   :  { %2868 = vrsqrt.f32 %v570_v39 }
 0x4dc   :  { %v2867_v42 = vpop.eup %2866 }
 0x4dd   :  { %v575_v46 = vmul.f32 %v2867_v42, %v482_v13  ;;  %v123_v13 = vld [vmem:[%s3738_s20 + $0x38] sm:$0xff] }
 0x4df   :  { %v581_v52 = vmul.f32 %v580_v44, %v575_v46 }
 0x4e0   :  { %v2869_v48 = vpop.eup %2868 }
 0x4e1   :  { %v576_v50 = vmul.f32 %v2869_v48, %v483_v9  ;;  %v587_v56 = vadd.f32 %v586_v49, %v581_v52  ;;  %v138_v9 = vpop.permute.xlu1 %137 }
 0x4e2   :  { %vm152_vm8 = vcmp.eq.s32.totalorder %v3159_v10, %v138_v9 }
 0x4e3   :  { %v582_v53 = vmul.f32 %v580_v44, %v576_v50  ;;  %v2414_v27 = vsel %vm152_vm8, 1.0, %v3021_v1 }
 0x4e5   :  { %v588_v57 = vadd.f32 %v586_v49, %v582_v53  ;;  %v141_v20 = vpop.permute.xlu1 %140 }
 0x4e6   :  { %vm153_vm6 = vcmp.eq.s32.totalorder %v3159_v10, %v141_v20 }
 0x4e7   :  { %v590_v59 = vpack.c.bf16 %v588_v57, %v587_v56  ;;  %v2415_v25 = vsel %vm153_vm6, 1.0, %v3021_v1 }
 0x4e8   :  { %v3346_v28 = vpack.c.bf16 %v2415_v25, %v2414_v27 }
 0x4e9   :  { %2644 = vmatmul.mubr.msk.bf16.vlgmr.msra.gmra.mxu0 %vm599_vm4, %v590_v59  ;;  %v144_v21 = vpop.permute.xlu1 %143 }
 0x4ea   :  { %2659 = vmatprep.mubr.msk.bf16.mxu0 %vm328_vm3, %v3309_v61  ;;  %vm154_vm9 = vcmp.eq.s32.totalorder %v3159_v10, %v144_v21 }
 0x4eb   :  { %v2416_v30 = vsel %vm154_vm9, 1.0, %v3021_v1 }
 0x5a9   :  { %v641_v62 = vpop.f32.mrf.mxu0 }
 0x5aa   :  { %v3316_v7 = vadd.f32 %v2434_v63, %v641_v62 }
 0x5ab   :  { %v2645_v5 = vpop.f32.mrf.mxu0 }
 0x5ad   :  { %v644_v6 = vpop.f32.mrf.mxu0 }
 0x5ae   :  { %v3318_v8 = vadd.f32 %v2434_v63, %v644_v6 }
 0x5af   :  { %v2646_v11 = vpop.f32.mrf.mxu0 }
 0x5b0   :  { %v648_v12 = vpack.c.bf16 %v3318_v8, %v3316_v7 }
 0x5b2   :  { %727 = vrot.lane.b32.xlu1 %v648_v12, %s3024_s16  ;;  %2647 = vmatprep.subr.bf16.mxu1 %v648_v12 }
 0x5b3   :  { %2648 = vmatpush3.bf16.msra.mxu1 %v648_v12 }
 0x5b4   :  { %2667 = vmatprep.subr.bf16.mxu1 %v3021_v1 }
 0x5b6   :  { %146 = vperm.xlu1 %2863, %v123_v13   ;;  %2650 = vmatmul.mubr.msk.bf16.vlgmr.msra.gmra.mxu1 %vm328_vm3, %v3245_v55 }
 0x5b7   :  { %2653 = vmatprep.mubr.msk.bf16.mxu1 %vm328_vm3, %v3252_v60 }
 0x5be   :  { %2654 = vmatmul.mubr.msk.bf16.gmra.mxu1 %vm328_vm3, %v3258_v0 }
 0x5bf   :  { %2675 = vmatprep.mubr.msk.bf16.mxu1 %vm3023_vm0, %v3021_v1 }
 0x624   :  { %v728_v24 = vpop.permute.xlu1 %727 }
 0x625   :  { %2657 = vmatprep.subr.bf16.mxu0 %v728_v24 }
 0x626   :  { %2658 = vmatpush3.bf16.msra.mxu0 %v728_v24 }
 0x627   :  { %2679 = vmatprep.subr.bf16.mxu0 %v3021_v1 }
 0x629   :  { %2660 = vmatmul.mubr.msk.bf16.vlgmr.msra.gmra.mxu0 %vm328_vm3, %v3342_v17 }
 0x62a   :  { %2663 = vmatprep.mubr.msk.bf16.mxu0 %vm328_vm3, %v3346_v28 }
 0x631   :  { %v147_v29 = vpop.permute.xlu1 %146 }
 0x632   :  { %vm155_vm10 = vcmp.eq.s32.totalorder %v3159_v10, %v147_v29 }
 0x633   :  { %v2417_v31 = vsel %vm155_vm10, 1.0, %v3021_v1 }
 0x634   :  { %v3356_v32 = vpack.c.bf16 %v2417_v31, %v2416_v30 }
 0x636   :  { %2664 = vmatmul.mubr.msk.bf16.gmra.mxu0 %vm328_vm3, %v3356_v32 }
 0x637   :  { %2687 = vmatprep.mubr.msk.bf16.mxu0 %vm3023_vm0, %v3021_v1 }
 0x676   :  { %v2651_v33 = vpop.f32.mrf.mxu1 }
 0x678   :  { %v695_v34 = vpop.f32.mrf.mxu1 }
 0x67a   :  { %v2652_v35 = vpop.f32.mrf.mxu1 }
 0x67c   :  { %v698_v38 = vpop.f32.mrf.mxu1 }
 0x67e   :  { %v2655_v47 = vpop.f32.mrf.mxu1 }
 0x680   :  { %v711_v50 = vpop.f32.mrf.mxu1 }
 0x682   :  { %v2656_v54 = vpop.f32.mrf.mxu1 }
 0x684   :  { %v714_v63 = vpop.f32.mrf.mxu1 }
 0x6e9   :  { %v3362_v36 = vpop.f32.mrf.mxu0 }
 0x6ea   :  { %v809_v10 = vmul.f32 %v3362_v36, %v2651_v33 }
 0x6eb   :  { %v3365_v37 = vpop.f32.mrf.mxu0 }
 0x6ec   :  { %v807_v39 = vmul.f32 %v3365_v37, %v695_v34  ;;  %v822_v40 = vsel %vm815_vm11, %v809_v10, 0.0 }
 0x6ed   :  { %v3369_v15 = vpop.f32.mrf.mxu0  ;;  %823 = vadd.xlane.f32.xlu0 %v822_v40 }
 0x6ee   :  { %v810_v42 = vmul.f32 %v3369_v15, %v2652_v35  ;;  %v816_v44 = vsel %vm815_vm11, %v807_v39, 0.0 }
 0x6ef   :  { %v3373_v46 = vpop.f32.mrf.mxu0  ;;  %817 = vadd.xlane.f32.xlu1 %v816_v44 }
 0x6f0   :  { %v808_v48 = vmul.f32 %v3373_v46, %v698_v38  ;;  %v825_v49 = vsel %vm815_vm11, %v810_v42, 0.0 }
 0x6f1   :  { %826 = vadd.xlane.f32.xlu0 %v825_v49 }
 0x6f2   :  { %v819_v52 = vsel %vm815_vm11, %v808_v48, 0.0 }
 0x6f5   :  { %820 = vadd.xlane.f32.xlu0 %v819_v52 }
 0x6f6   :  { %v3378_v53 = vpop.f32.mrf.mxu0 }
 0x6f7   :  { %v813_v12 = vmul.f32 %v3378_v53, %v2655_v47 }
 0x6f8   :  { %v3380_v56 = vpop.f32.mrf.mxu0 }
 0x6f9   :  { %v811_v57 = vmul.f32 %v3380_v56, %v711_v50  ;;  %v834_v14 = vsel %vm815_vm11, %v813_v12, 0.0 }
 0x6fa   :  { %v3383_v58 = vpop.f32.mrf.mxu0 }
 0x6fb   :  { %v814_v59 = vmul.f32 %v3383_v58, %v2656_v54  ;;  %v828_v62 = vsel %vm815_vm11, %v811_v57, 0.0 }
 0x6fc   :  { %v3387_v5 = vpop.f32.mrf.mxu0  ;;  %829 = vadd.xlane.f32.xlu0 %v828_v62 }
 0x6fd   :  { %v812_v6 = vmul.f32 %v3387_v5, %v714_v63  ;;  %v837_v11 = vsel %vm815_vm11, %v814_v59, 0.0 }
 0x6fe   :  { %838 = vadd.xlane.f32.xlu1 %v837_v11 }
 0x6ff   :  { %v831_v13 = vsel %vm815_vm11, %v812_v6, 0.0 }
 0x700   :  { %832 = vadd.xlane.f32.xlu0 %v831_v13 }
 0x704   :  { %835 = vadd.xlane.f32.xlu0 %v834_v14 }
 0x776   :  { %v824_v18 = vpop.xlane.xlu0 %823 }
 0x777   :  { %v842_v31 = vmul.f32 0.17677669, %v824_v18 }
 0x778   :  { %v818_v21 = vpop.xlane.xlu1 %817 }
 0x779   :  { %v840_v34 = vmul.f32 0.17677669, %v818_v21 }
 0x77a   :  { %v827_v9 = vpop.xlane.xlu0 %826 }
 0x77b   :  { %v843_v35 = vmul.f32 0.17677669, %v827_v9 }
 0x77e   :  { %v821_v20 = vpop.xlane.xlu0 %820 }
 0x77f   :  { %v841_v27 = vmul.f32 0.17677669, %v821_v20 }
 0x785   :  { %v830_v22 = vpop.xlane.xlu0 %829 }
 0x786   :  { %v844_v29 = vmul.f32 0.17677669, %v830_v22 }
 0x787   :  { %v839_v24 = vpop.xlane.xlu1 %838 }
 0x788   :  { %v847_v30 = vmul.f32 0.17677669, %v839_v24  ;;  %v848_v39 = vmax.f32 %v840_v34, %v844_v29 }
 0x789   :  { %v833_v25 = vpop.xlane.xlu0 %832 }
 0x78a   :  { %v845_v26 = vmul.f32 0.17677669, %v833_v25  ;;  %v851_v40 = vmax.f32 %v843_v35, %v847_v30 }
 0x78c   :  { %v849_v10 = vmax.f32 %v841_v27, %v845_v26 }
 0x78d   :  { %v836_v33 = vpop.xlane.xlu0 %835 }
 0x78e   :  { %v846_v38 = vmul.f32 0.17677669, %v836_v33  ;;  %v852_v44 = vmax.f32 %v848_v39, %v849_v10 }
 0x790   :  { %v850_v42 = vmax.f32 %v842_v31, %v846_v38 }
 0x792   :  { %v853_v47 = vmax.f32 %v850_v42, %v851_v40 }
 0x794   :  { %v854_v48 = vmax.f32 %v852_v44, %v853_v47 }
 0x796   :  { %v855_v49 = vrot.slane %v854_v48, 4 }
 0x798   :  { %v856_v50 = vmax.f32 %v854_v48, %v855_v49 }
 0x79a   :  { %v857_v52 = vrot.slane %v856_v50, 2 }
 0x79c   :  { %v858_v54 = vmax.f32 %v856_v50, %v857_v52 }
 0x79e   :  { %v859_v57 = vrot.slane %v858_v54, 1 }
 0x7a0   :  { %v860_v59 = vmax.f32 %v858_v54, %v859_v57 }
 0x7a2   :  { %v867_v62 = vsub.f32 %v846_v38, %v860_v59  ;;  %v868_v63 = vsub.f32 %v847_v30, %v860_v59  ;;  %v865_v6 = vsub.f32 %v844_v29, %v860_v59  ;;  %v866_v11 = vsub.f32 %v845_v26, %v860_v59 }
 0x7a3   :  { %v863_v12 = vsub.f32 %v842_v31, %v860_v59  ;;  %v864_v13 = vsub.f32 %v843_v35, %v860_v59  ;;  %v861_v20 = vsub.f32 %v840_v34, %v860_v59  ;;  %v862_v22 = vsub.f32 %v841_v27, %v860_v59 }
 0x7a4   :  { %v881_v14 = vmul.f32 1.442695, %v867_v62  ;;  %v883_v18 = vmul.f32 1.442695, %v868_v63  ;;  %v877_v9 = vmul.f32 1.442695, %v865_v6 }
 0x7a5   :  { %v879_v21 = vmul.f32 1.442695, %v866_v11  ;;  %v873_v24 = vmul.f32 1.442695, %v863_v12  ;;  %v875_v25 = vmul.f32 1.442695, %v864_v13 }
 0x7a6   :  { %2870 = vpow2.f32 %v881_v14  ;;  %v869_v33 = vmul.f32 1.442695, %v861_v20  ;;  %v871_v10 = vmul.f32 1.442695, %v862_v22  ;;  %v373_v14 = vmax.f32 %v3286_v16, 1.0  ;;  %v1039_v22 = vld [vmem:[#allocation2 + $0x10] sm:$0xff] }
 0x7a7   :  { %2872 = vpow2.f32 %v883_v18  ;;  %v3427_v20 = vld [vmem:[%s3724_s9 + $0x8] sm:$0x3] }
 0x7a8   :  { %2874 = vpow2.f32 %v877_v9 }
 0x7a9   :  { %2876 = vpow2.f32 %v879_v21  ;;  %v1101_v21 = vrot.slane %v3427_v20, %v3302_v45 }
 0x7aa   :  { %2878 = vpow2.f32 %v873_v24  ;;  %v1040_v24 = vld [vmem:[#allocation2 + $0x18] sm:$0xff] }
 0x7ab   :  { %2880 = vpow2.f32 %v875_v25  ;;  %v1053_v25 = vpack.c.bf16 %v1040_v24, %v1039_v22 }
 0x7ac   :  { %2882 = vpow2.f32 %v869_v33  ;;  %v1038_v33 = vld [vmem:[#allocation2 + $0x8] sm:$0xff] }
 0x7ad   :  { %2884 = vpow2.f32 %v871_v10 }
 0x7b3   :  { %v2871_v26 = vpop.eup %2870 }
 0x7b4   :  { %v2873_v29 = vpop.eup %2872  ;;  %v936_v30 = vmul.f32 %v2871_v26, %v3378_v53 }
 0x7b5   :  { %v2875_v31 = vpop.eup %2874  ;;  %v888_v34 = vpack.c.bf16 %v2873_v29, %v2871_v26  ;;  %v937_v27 = vmul.f32 %v2873_v29, %v3383_v58 }
 0x7b6   :  { %v2877_v35 = vpop.eup %2876  ;;  %v934_v38 = vmul.f32 %v2875_v31, %v3380_v56 }
 0x7b7   :  { %v2879_v39 = vpop.eup %2878  ;;  %2668 = vmatpush3.bf16.msra.mxu1 %v888_v34  ;;  %v941_v40 = vpack.c.bf16 %v937_v27, %v936_v30  ;;  %v935_v42 = vmul.f32 %v2877_v35, %v3387_v5  ;;  %v887_v48 = vpack.c.bf16 %v2877_v35, %v2875_v31 }
 0x7b8   :  { %v2881_v44 = vpop.eup %2880  ;;  %2669 = vmatprep.subr.bf16.mxu1 %v3021_v1  ;;  %v932_v49 = vmul.f32 %v2879_v39, %v3362_v36 }
 0x7b9   :  { %v2883_v47 = vpop.eup %2882  ;;  %952 = vrot.lane.b32.xlu0 %v941_v40, %s3025_s6  ;;  %v940_v53 = vpack.c.bf16 %v935_v42, %v934_v38  ;;  %v933_v58 = vmul.f32 %v2881_v44, %v3369_v15  ;;  %v886_v57 = vpack.c.bf16 %v2881_v44, %v2879_v39 }
 0x7ba   :  { %v2885_v50 = vpop.eup %2884  ;;  %v930_v56 = vmul.f32 %v2883_v47, %v3365_v37 }
 0x7bb   :  { %950 = vrot.lane.b32.xlu1 %v940_v53, %s3025_s6  ;;  %2670 = vmatpush3.bf16.msra.mxu1 %v887_v48  ;;  %v931_v5 = vmul.f32 %v2885_v50, %v3373_v46  ;;  %v939_v52 = vpack.c.bf16 %v933_v58, %v932_v49  ;;  %v885_v36 = vpack.c.bf16 %v2885_v50, %v2883_v47 }
 0x7bc   :  { %2671 = vmatprep.subr.bf16.mxu1 %v3021_v1 }
 0x7bd   :  { %v938_v54 = vpack.c.bf16 %v931_v5, %v930_v56 }
 0x7bf   :  { %948 = vrot.lane.b32.xlu1 %v939_v52, %s3025_s6  ;;  %946 = vrot.lane.b32.xlu0 %v938_v54, %s3025_s6 }
 0x7c0   :  { %2672 = vmatpush3.bf16.msra.mxu1 %v886_v57  ;;  %v372_v57 = vmax.f32 %v3284_v23, 1.0 }
 0x7c1   :  { %2673 = vmatprep.subr.bf16.mxu1 %v3021_v1 }
 0x7c4   :  { %2674 = vmatpush3.bf16.msra.mxu1 %v885_v36 }
 0x7c5   :  { %2691 = vmatprep.subr.bf16.mxu1 %v3021_v1 }
 0x7c7   :  { %2676 = vmatmul.mubr.msk.bf16.vlgmr.msra.gmra.mxu1 %vm267_vm14, %v3261_v2 }
 0x7c8   :  { %2695 = vmatprep.mubr.msk.bf16.mxu1 %vm3023_vm0, %v3021_v1  ;;  %2692 = vmatpush3.bf16.msra.mxu1 %v1053_v25 }
 0x7c9   :  { %2693 = vmatprep.subr.bf16.mxu1 %v3021_v1 }
 0x82b   :  { %v953_v37 = vpop.permute.xlu0 %952 }
 0x82c   :  { %2680 = vmatpush3.bf16.msra.mxu0 %v953_v37 }
 0x82d   :  { %v951_v15 = vpop.permute.xlu1 %950  ;;  %2681 = vmatprep.subr.bf16.mxu0 %v3021_v1 }
 0x830   :  { %2682 = vmatpush3.bf16.msra.mxu0 %v951_v15 }
 0x831   :  { %2683 = vmatprep.subr.bf16.mxu0 %v3021_v1  ;;  %v949_v46 = vpop.permute.xlu1 %948  ;;  %v947_v59 = vpop.permute.xlu0 %946 }
 0x834   :  { %2684 = vmatpush3.bf16.msra.mxu0 %v949_v46 }
 0x835   :  { %2685 = vmatprep.subr.bf16.mxu0 %v3021_v1 }
 0x838   :  { %2686 = vmatpush3.bf16.msra.mxu0 %v947_v59 }
 0x83b   :  { %2688 = vmatmul.mubr.msk.bf16.vlgmr.msra.gmra.mxu0 %vm267_vm14, %v3261_v2 }
 0x83c   :  { %2701 = vmatprep.mubr.msk.bf16.mxu0 %vm328_vm3, %v3309_v61 }
 0x887   :  { %v923_v62 = vpop.f32.mrf.mxu1 }
 0x888   :  { %v999_v63 = vmax.f32 %v923_v62, 1e-30 }
 0x889   :  { %v2677_v6 = vpop.f32.mrf.mxu1 }
 0x88a   :  { %2886 = vrcp.f32 %v999_v63 }
 0x88b   :  { %v926_v11 = vpop.f32.mrf.mxu1 }
 0x88c   :  { %v1000_v12 = vmax.f32 %v926_v11, 1e-30 }
 0x88d   :  { %v2678_v13 = vpop.f32.mrf.mxu1 }
 0x88e   :  { %2888 = vrcp.f32 %v1000_v12 }
 0x88f   :  { %2890 = vrcp.f32 %v373_v14  ;;  %v1043_v14 = vld [vmem:[%s3723_s8 + $0x10] sm:$0xff] }
 0x897   :  { %v2887_v18 = vpop.eup %2886 }
 0x898   :  { %1005 = vperm.xlu1 %2863, %v2887_v18   ;;  %v1044_v18 = vld [vmem:[%s3723_s8 + $0x18] sm:$0xff] }
 0x89b   :  { %v2889_v9 = vpop.eup %2888 }
 0x89c   :  { %1017 = vrot.lane.b32.xlu1 %v3316_v7, %s3025_s6  ;;  %1010 = vperm.xlu0 %2862, %v2889_v9   ;;  %v2891_v16 = vpop.eup %2890  ;;  %v1037_v7 = vld [vmem:[#allocation2] sm:$0xff]  ;;  %v1294_v9 = vpack.c.bf16 %v1044_v18, %v1043_v14 }
 0x89d   :  { %v1052_v10 = vpack.c.bf16 %v1038_v33, %v1037_v7  ;;  %v3476_v33 = vld [vmem:[%s3724_s9] sm:$0xff] }
 0x89f   :  { %2694 = vmatpush3.bf16.msra.mxu1 %v1052_v10 }
 0x8a0   :  { %1019 = vrot.lane.b32.xlu0 %v3318_v8, %s3025_s6 }
 0x8a4   :  { %1103 = vrot.lane.b32.xlu0 %v1101_v21, %s3024_s16  ;;  %v1041_v21 = vld [vmem:[%s3723_s8] sm:$0xff] }
 0x8a8   :  { %1579 = vperm.xlu0 %2862, %v2891_v16   ;;  %v1042_v16 = vld [vmem:[%s3723_s8 + $0x8] sm:$0xff] }
 0x8a9   :  { %v1293_v22 = vpack.c.bf16 %v1042_v16, %v1041_v21 }
 0x8fb   :  { %v992_v26 = vpop.f32.mrf.mxu0 }
 0x8fd   :  { %v2689_v29 = vpop.f32.mrf.mxu0 }
 0x8fe   :  { %v1248_v29 = vrot.slane %v3476_v33, %v3298_v41 }
 0x8ff   :  { %v995_v8 = vpop.f32.mrf.mxu0 }
 0x901   :  { %v2690_v30 = vpop.f32.mrf.mxu0 }
 0x913   :  { %v1006_v31 = vpop.permute.xlu1 %1005 }
 0x914   :  { %v1013_v34 = vmul.f32 %v1006_v31, %v992_v26 }
 0x917   :  { %v1018_v27 = vpop.permute.xlu1 %1017  ;;  %v1011_v35 = vpop.permute.xlu0 %1010 }
 0x918   :  { %v1023_v38 = vadd.f32 %v1018_v27, %v1013_v34  ;;  %v1014_v40 = vmul.f32 %v1011_v35, %v995_v8 }
 0x91a   :  { %v1027_v39 = vmin.f32 %v1023_v38, 0.0  ;;  %vm1025_vm12 = vcmp.gt.f32.partialorder %v1023_v38, 0.0 }
 0x91b   :  { %v1020_v42 = vpop.permute.xlu0 %1019 }
 0x91c   :  { %v1029_v44 = vmul.f32 1.442695, %v1027_v39  ;;  %v1024_v47 = vadd.f32 %v1020_v42, %v1014_v40 }
 0x91e   :  { %2892 = vpow2.f32 %v1029_v44  ;;  %v1028_v53 = vmin.f32 %v1024_v47, 0.0  ;;  %vm1026_vm13 = vcmp.gt.f32.partialorder %v1024_v47, 0.0 }
 0x91f   :  { %v1104_v15 = vpop.permute.xlu0 %1103 }
 0x920   :  { %v1031_v48 = vmul.f32 1.442695, %v1028_v53 }
 0x922   :  { %2894 = vpow2.f32 %v1031_v48 }
 0x923   :  { %2896 = vrcp.f32 %v372_v57 }
 0x92b   :  { %v2893_v49 = vpop.eup %2892 }
 0x92c   :  { %v2446_v58 = vadd.f32 -1.0, %v2893_v49  ;;  %v1268_v49 = vrot.slane %v3476_v33, %v3302_v45 }
 0x92e   :  { %v3435_v5 = vsel %vm1025_vm12, %v1023_v38, %v2446_v58 }
 0x92f   :  { %v2895_v50 = vpop.eup %2894 }
 0x930   :  { %v2447_v56 = vadd.f32 -1.0, %v2895_v50  ;;  %v2897_v12 = vpop.eup %2896 }
 0x932   :  { %v3437_v52 = vsel %vm1026_vm13, %v1024_v47, %v2447_v56 }
 0x933   :  { %v1051_v54 = vpack.c.bf16 %v3437_v52, %v3435_v5 }
 0x935   :  { %2696 = vmatmul.mubr.msk.bf16.vlgmr.msra.gmra.mxu1 %vm815_vm11, %v1051_v54 }
 0x936   :  { %2711 = vmatprep.mubr.msk.bf16.mxu1 %vm328_vm3, %v3233_v51 }
 0x9f5   :  { %v1091_v36 = vpop.f32.mrf.mxu1 }
 0x9f6   :  { %v1106_v11 = vadd.f32 %v1104_v15, %v1091_v36 }
 0x9f7   :  { %v2697_v37 = vpop.f32.mrf.mxu1 }
 0x9f8   :  { %v1108_v23 = vmax.f32 %v1106_v11, 0.0 }
 0x9f9   :  { %v1094_v46 = vpop.f32.mrf.mxu1 }
 0x9fa   :  { %v1107_v59 = vadd.f32 %v1104_v15, %v1094_v46  ;;  %v1110_v62 = vpack.c.bf16 %v1094_v46, %v1091_v36 }
 0x9fb   :  { %v2698_v63 = vpop.f32.mrf.mxu1 }
 0x9fc   :  { %v1109_v6 = vmax.f32 %v1107_v59, 0.0  ;;  %1112 = vrot.lane.b32.xlu1 %v1110_v62, %s3025_s6  ;;  %2709 = vmatprep.subr.bf16.mxu1 %v1110_v62 }
 0x9fd   :  { %2710 = vmatpush3.bf16.msra.mxu1 %v1110_v62  ;;  %v1280_v62 = vrot.slane %v3476_v33, %v3271_v4 }
 0x9fe   :  { %1588 = vrot.lane.b32.xlu0 %v1109_v6, %s3024_s16 }
 0xa00   :  { %1574 = vperm.xlu1 %2863, %v2897_v12   ;;  %2712 = vmatmul.mubr.msk.bf16.vlgmr.msra.gmra.mxu1 %vm328_vm3, %v3245_v55 }
 0xa01   :  { %2715 = vmatprep.mubr.msk.bf16.mxu1 %vm328_vm3, %v3252_v60 }
 0xa04   :  { %1586 = vrot.lane.b32.xlu1 %v1108_v23, %s3024_s16 }
 0xa08   :  { %2716 = vmatmul.mubr.msk.bf16.gmra.mxu1 %vm328_vm3, %v3258_v0 }
 0xa6e   :  { %v1113_v13 = vpop.permute.xlu1 %1112 }
 0xa6f   :  { %2699 = vmatprep.subr.bf16.mxu0 %v1113_v13 }
 0xa70   :  { %2700 = vmatpush3.bf16.msra.mxu0 %v1113_v13 }
 0xa71   :  { %2719 = vmatprep.subr.bf16.mxu0 %v1294_v9 }
 0xa73   :  { %2702 = vmatmul.mubr.msk.bf16.vlgmr.msra.gmra.mxu0 %vm328_vm3, %v3342_v17 }
 0xa74   :  { %2705 = vmatprep.mubr.msk.bf16.mxu0 %vm328_vm3, %v3346_v28  ;;  %2720 = vmatpush3.bf16.msra.mxu0 %v1294_v9 }
 0xa75   :  { %2721 = vmatprep.subr.bf16.mxu0 %v1293_v22 }
 0xa78   :  { %2722 = vmatpush3.bf16.msra.mxu0 %v1293_v22 }
 0xa79   :  { %2743 = vmatprep.subr.bf16.mxu0 %v3021_v1 }
 0xa7b   :  { %2706 = vmatmul.mubr.msk.bf16.gmra.mxu0 %vm328_vm3, %v3356_v32 }
 0xac0   :  { %v2713_v24 = vpop.f32.mrf.mxu1 }
 0xac2   :  { %v1214_v25 = vpop.f32.mrf.mxu1 }
 0xac4   :  { %v2714_v7 = vpop.f32.mrf.mxu1 }
 0xac6   :  { %v1217_v10 = vpop.f32.mrf.mxu1 }
 0xac8   :  { %v2717_v31 = vpop.f32.mrf.mxu1 }
 0xaca   :  { %v1230_v42 = vpop.f32.mrf.mxu1 }
 0xacc   :  { %v2718_v36 = vpop.f32.mrf.mxu1 }
 0xace   :  { %v1233_v9 = vpop.f32.mrf.mxu1 }
 0xb33   :  { %v2703_v26 = vpop.f32.mrf.mxu0 }
 0xb34   :  { %v1223_v8 = vadd.f32 %v2713_v24, %v2703_v26 }
 0xb35   :  { %v1149_v30 = vpop.f32.mrf.mxu0 }
 0xb36   :  { %v1215_v34 = vadd.f32 %v1214_v25, %v1149_v30  ;;  %v1251_v27 = vadd.f32 %v1248_v29, %v1223_v8 }
 0xb37   :  { %v2704_v35 = vpop.f32.mrf.mxu0 }
 0xb38   :  { %v1249_v38 = vadd.f32 %v1248_v29, %v1215_v34  ;;  %v1226_v39 = vadd.f32 %v2714_v7, %v2704_v35  ;;  %v1259_v48 = vmax.f32 %v1251_v27, 0.0 }
 0xb39   :  { %v1152_v40 = vpop.f32.mrf.mxu0 }
 0xb3a   :  { %v1257_v44 = vmax.f32 %v1249_v38, 0.0  ;;  %v1252_v47 = vadd.f32 %v1248_v29, %v1226_v39  ;;  %v1218_v53 = vadd.f32 %v1217_v10, %v1152_v40  ;;  %v1271_v63 = vmul.f32 %v1268_v49, %v1259_v48 }
 0xb3b   :  { %v2707_v58 = vpop.f32.mrf.mxu0 }
 0xb3c   :  { %v1260_v50 = vmax.f32 %v1252_v47, 0.0  ;;  %v1250_v56 = vadd.f32 %v1248_v29, %v1218_v53  ;;  %v1239_v54 = vadd.f32 %v2717_v31, %v2707_v58  ;;  %v1269_v37 = vmul.f32 %v1268_v49, %v1257_v44 }
 0xb3d   :  { %v1165_v57 = vpop.f32.mrf.mxu0  ;;  %v1283_v24 = vadd.f32 %v1280_v62, %v1271_v63 }
 0xb3e   :  { %v1272_v15 = vmul.f32 %v1268_v49, %v1260_v50  ;;  %v1258_v46 = vmax.f32 %v1250_v56, 0.0  ;;  %v1231_v59 = vadd.f32 %v1230_v42, %v1165_v57  ;;  %v1255_v12 = vadd.f32 %v1248_v29, %v1239_v54  ;;  %v1045_v50 = vld [vmem:[%s3723_s8 + $0x20] sm:$0xff]  ;;  %v1046_v56 = vld [vmem:[%s3723_s8 + $0x28] sm:$0xff] }
 0xb3f   :  { %v2708_v6 = vpop.f32.mrf.mxu0  ;;  %v1281_v21 = vadd.f32 %v1280_v62, %v1269_v37  ;;  %v1412_v54 = vpack.c.bf16 %v1046_v56, %v1045_v50  ;;  %v3504_v57 = vsub.s32 3, %v3268_v3 }
 0xb40   :  { %v1270_v11 = vmul.f32 %v1268_v49, %v1258_v46  ;;  %v1253_v23 = vadd.f32 %v1248_v29, %v1231_v59  ;;  %v1242_v13 = vadd.f32 %v2718_v36, %v2708_v6  ;;  %v1284_v14 = vadd.f32 %v1280_v62, %v1272_v15 }
 0xb41   :  { %v1168_v18 = vpop.f32.mrf.mxu0  ;;  %v1263_v10 = vmax.f32 %v1255_v12, 0.0  ;;  %v1298_v36 = vrot.slane %v3476_v33, %v3504_v57  ;;  %v1386_v46 = vsub.s32 4, %v3268_v3 }
 0xb42   :  { %v1282_v16 = vadd.f32 %v1280_v62, %v1270_v11  ;;  %v1256_v22 = vadd.f32 %v1248_v29, %v1242_v13  ;;  %v1261_v25 = vmax.f32 %v1253_v23, 0.0  ;;  %v1234_v7 = vadd.f32 %v1233_v9, %v1168_v18 }
 0xb43   :  { %v1290_v30 = vpack.c.bf16 %v1284_v14, %v1283_v24  ;;  %v1275_v38 = vmul.f32 %v1268_v49, %v1263_v10  ;;  %v1387_v23 = vrot.slane %v3476_v33, %v1386_v46  ;;  %v1398_v13 = vsub.s32 5, %v3268_v3 }
 0xb44   :  { %v1264_v26 = vmax.f32 %v1256_v22, 0.0  ;;  %v1289_v8 = vpack.c.bf16 %v1282_v16, %v1281_v21  ;;  %v1254_v31 = vadd.f32 %v1248_v29, %v1234_v7  ;;  %v1273_v27 = vmul.f32 %v1268_v49, %v1261_v25  ;;  %v1047_v29 = vld [vmem:[%s3723_s8 + $0x30] sm:$0xff] }
 0xb45   :  { %v1287_v47 = vadd.f32 %v1280_v62, %v1275_v38  ;;  %v1399_v7 = vrot.slane %v3476_v33, %v1398_v13 }
 0xb46   :  { %v1276_v34 = vmul.f32 %v1268_v49, %v1264_v26  ;;  %2723 = vmatprep.mubr.msk.bf16.mxu0 %vm815_vm11, %v1289_v8  ;;  %v1262_v35 = vmax.f32 %v1254_v31, 0.0  ;;  %v1285_v42 = vadd.f32 %v1280_v62, %v1273_v27 }
 0xb47   :  { %2724 = vmatmul.mubr.msk.bf16.vlgmr.msra.gmra.mxu0 %vm815_vm11, %v1290_v30 }
 0xb48   :  { %v1274_v39 = vmul.f32 %v1268_v49, %v1262_v35  ;;  %v1288_v40 = vadd.f32 %v1280_v62, %v1276_v34  ;;  %v1048_v49 = vld [vmem:[%s3723_s8 + $0x38] sm:$0xff] }
 0xb49   :  { %v1413_v58 = vpack.c.bf16 %v1048_v49, %v1047_v29 }
 0xb4a   :  { %v1286_v44 = vadd.f32 %v1280_v62, %v1274_v39  ;;  %v1292_v48 = vpack.c.bf16 %v1288_v40, %v1287_v47 }
 0xb4b   :  { %2731 = vmatprep.subr.bf16.mxu1 %v1413_v58 }
 0xb4c   :  { %v1291_v53 = vpack.c.bf16 %v1286_v44, %v1285_v42  ;;  %2732 = vmatpush3.bf16.msra.mxu1 %v1413_v58 }
 0xb4d   :  { %2733 = vmatprep.subr.bf16.mxu1 %v1412_v54 }
 0xb4e   :  { %2727 = vmatprep.mubr.msk.bf16.mxu0 %vm815_vm11, %v1291_v53 }
 0xb4f   :  { %2728 = vmatmul.mubr.msk.bf16.gmra.mxu0 %vm815_vm11, %v1292_v48 }
 0xb50   :  { %2751 = vmatprep.mubr.msk.bf16.mxu0 %vm3023_vm0, %v3021_v1  ;;  %2734 = vmatpush3.bf16.msra.mxu1 %v1412_v54 }
 0xb51   :  { %2755 = vmatprep.subr.bf16.mxu1 %v3021_v1 }
 0xc07   :  { %v2725_v37 = vpop.f32.mrf.mxu0 }
 0xc08   :  { %v1354_v15 = vadd.f32 %v2725_v37, %v1298_v36 }
 0xc09   :  { %v1345_v59 = vpop.f32.mrf.mxu0 }
 0xc0a   :  { %v1346_v62 = vadd.f32 %v1345_v59, %v1298_v36  ;;  %v1378_v12 = vmax.f32 %v1354_v15, 0.0 }
 0xc0b   :  { %v2726_v63 = vpop.f32.mrf.mxu0 }
 0xc0c   :  { %v1376_v6 = vmax.f32 %v1346_v62, 0.0  ;;  %v1357_v11 = vadd.f32 %v2726_v63, %v1298_v36  ;;  %v1390_v25 = vmul.f32 %v1387_v23, %v1378_v12  ;;  %v1416_v12 = vsub.s32 6, %v3268_v3 }
 0xc0d   :  { %v1348_v14 = vpop.f32.mrf.mxu0 }
 0xc0e   :  { %v1379_v18 = vmax.f32 %v1357_v11, 0.0  ;;  %v1349_v9 = vadd.f32 %v1348_v14, %v1298_v36  ;;  %v1388_v21 = vmul.f32 %v1387_v23, %v1376_v6  ;;  %v1402_v38 = vadd.f32 %v1399_v7, %v1390_v25 }
 0xc0f   :  { %v2729_v24 = vpop.f32.mrf.mxu0 }
 0xc10   :  { %v1391_v16 = vmul.f32 %v1387_v23, %v1379_v18  ;;  %v1377_v22 = vmax.f32 %v1349_v9, 0.0  ;;  %v1370_v26 = vadd.f32 %v2729_v24, %v1298_v36  ;;  %v1400_v34 = vadd.f32 %v1399_v7, %v1388_v21 }
 0xc11   :  { %v1361_v8 = vpop.f32.mrf.mxu0  ;;  %v1505_v21 = vsub.s32 7, %v3268_v3 }
 0xc12   :  { %v1389_v10 = vmul.f32 %v1387_v23, %v1377_v22  ;;  %v1403_v30 = vadd.f32 %v1399_v7, %v1391_v16  ;;  %v1362_v31 = vadd.f32 %v1361_v8, %v1298_v36  ;;  %v1382_v44 = vmax.f32 %v1370_v26, 0.0 }
 0xc13   :  { %v2730_v35 = vpop.f32.mrf.mxu0 }
 0xc14   :  { %v1401_v27 = vadd.f32 %v1399_v7, %v1389_v10  ;;  %v1380_v39 = vmax.f32 %v1362_v31, 0.0  ;;  %v1373_v40 = vadd.f32 %v2730_v35, %v1298_v36  ;;  %v1409_v53 = vpack.c.bf16 %v1403_v30, %v1402_v38 }
 0xc15   :  { %v1364_v47 = vpop.f32.mrf.mxu0  ;;  %v1394_v56 = vmul.f32 %v1387_v23, %v1382_v44  ;;  %v1506_v10 = vrot.slane %v3476_v33, %v1505_v21 }
 0xc16   :  { %v1408_v42 = vpack.c.bf16 %v1401_v27, %v1400_v34  ;;  %v1383_v48 = vmax.f32 %v1373_v40, 0.0  ;;  %v1365_v29 = vadd.f32 %v1364_v47, %v1298_v36  ;;  %v1392_v49 = vmul.f32 %v1387_v23, %v1380_v39 }
 0xc17   :  { %v1406_v62 = vadd.f32 %v1399_v7, %v1394_v56  ;;  %v1518_v39 = vrot.slane %v3427_v20, %v3298_v41 }
 0xc18   :  { %2735 = vmatprep.mubr.msk.bf16.mxu1 %vm815_vm11, %v1408_v42  ;;  %v1395_v58 = vmul.f32 %v1387_v23, %v1383_v48  ;;  %v1381_v50 = vmax.f32 %v1365_v29, 0.0  ;;  %v1404_v15 = vadd.f32 %v1399_v7, %v1392_v49 }
 0xc19   :  { %2736 = vmatmul.mubr.msk.bf16.vlgmr.msra.gmra.mxu1 %vm815_vm11, %v1409_v53 }
 0xc1a   :  { %v1393_v54 = vmul.f32 %v1387_v23, %v1381_v50  ;;  %v1407_v37 = vadd.f32 %v1399_v7, %v1395_v58  ;;  %v1417_v23 = vrot.slane %v3476_v33, %v1416_v12 }
 0xc1c   :  { %v1405_v59 = vadd.f32 %v1399_v7, %v1393_v54  ;;  %v1411_v6 = vpack.c.bf16 %v1407_v37, %v1406_v62 }
 0xc1e   :  { %v1410_v63 = vpack.c.bf16 %v1405_v59, %v1404_v15 }
 0xc20   :  { %2739 = vmatprep.mubr.msk.bf16.mxu1 %vm815_vm11, %v1410_v63 }
 0xc21   :  { %2740 = vmatmul.mubr.msk.bf16.gmra.mxu1 %vm815_vm11, %v1411_v6 }
 0xc22   :  { %2759 = vmatprep.mubr.msk.bf16.mxu1 %vm3023_vm0, %v3021_v1 }
 0xcd9   :  { %v2737_v36 = vpop.f32.mrf.mxu1 }
 0xcda   :  { %v1473_v30 = vadd.f32 %v2737_v36, %v1417_v23 }
 0xcdb   :  { %v1464_v11 = vpop.f32.mrf.mxu1 }
 0xcdc   :  { %v1497_v53 = vmax.f32 %v1473_v30, 0.0  ;;  %v1465_v48 = vadd.f32 %v1464_v11, %v1417_v23  ;;  %v3545_v30 = vpop.permute.xlu1 %1574 }
 0xcdd   :  { %v2738_v14 = vpop.f32.mrf.mxu1 }
 0xcde   :  { %v1476_v26 = vadd.f32 %v2738_v14, %v1417_v23  ;;  %v1509_v15 = vmul.f32 %v1506_v10, %v1497_v53  ;;  %v1495_v59 = vmax.f32 %v1465_v48, 0.0 }
 0xcdf   :  { %v1467_v18 = vpop.f32.mrf.mxu1 }
 0xce0   :  { %v1498_v40 = vmax.f32 %v1476_v26, 0.0  ;;  %v1468_v42 = vadd.f32 %v1467_v18, %v1417_v23  ;;  %v1521_v36 = vadd.f32 %v1518_v39, %v1509_v15  ;;  %v1507_v14 = vmul.f32 %v1506_v10, %v1495_v59  ;;  %v3540_v26 = vld [vmem:[#allocation7 + $0x8] sm:$0x3] }
 0xce1   :  { %v2741_v9 = vpop.f32.mrf.mxu1 }
 0xce2   :  { %v1489_v16 = vadd.f32 %v2741_v9, %v1417_v23  ;;  %v1510_v50 = vmul.f32 %v1506_v10, %v1498_v40  ;;  %v1496_v56 = vmax.f32 %v1468_v42, 0.0  ;;  %v1587_v40 = vpop.permute.xlu1 %1586 }
 0xce3   :  { %v1480_v22 = vpop.f32.mrf.mxu1 }
 0xce4   :  { %v1501_v24 = vmax.f32 %v1489_v16, 0.0  ;;  %v1481_v25 = vadd.f32 %v1480_v22, %v1417_v23  ;;  %v1522_v20 = vadd.f32 %v1518_v39, %v1510_v50  ;;  %v1508_v63 = vmul.f32 %v1506_v10, %v1496_v56  ;;  %v1596_v16 = vld [vmem:[#allocation5 + $0x10] sm:$0xff]  ;;  %v1597_v22 = vld [vmem:[#allocation5 + $0x18] sm:$0xff] }
 0xce5   :  { %v2742_v7 = vpop.f32.mrf.mxu1 }
 0xce6   :  { %v1492_v8 = vadd.f32 %v2742_v7, %v1417_v23  ;;  %v1513_v34 = vmul.f32 %v1506_v10, %v1501_v24  ;;  %v1499_v27 = vmax.f32 %v1481_v25, 0.0  ;;  %v1528_v11 = vpack.c.bf16 %v1522_v20, %v1521_v36  ;;  %v1594_v25 = vld [vmem:[#allocation5] sm:$0xff]  ;;  %v1595_v7 = vld [vmem:[#allocation5 + $0x8] sm:$0xff] }
 0xce7   :  { %v1483_v31 = vpop.f32.mrf.mxu1  ;;  %v1520_v18 = vadd.f32 %v1518_v39, %v1508_v63  ;;  %v1610_v24 = vpack.c.bf16 %v1597_v22, %v1596_v16  ;;  %v3588_v63 = vld [vmem:[#allocation7] sm:$0xff] }
 0xce8   :  { %v1502_v35 = vmax.f32 %v1492_v8, 0.0  ;;  %v1484_v38 = vadd.f32 %v1483_v31, %v1417_v23  ;;  %v1525_v29 = vadd.f32 %v1518_v39, %v1513_v34  ;;  %v1511_v49 = vmul.f32 %v1506_v10, %v1499_v27  ;;  %v3547_v31 = vpop.permute.xlu0 %1579 }
 0xce9   :  { %v1519_v23 = vadd.f32 %v1518_v39, %v1507_v14  ;;  %2756 = vmatpush3.bf16.msra.mxu1 %v1610_v24  ;;  %v1658_v8 = vrot.slane %v3540_v26, %v3302_v45  ;;  %v1805_v14 = vrot.slane %v3588_v63, %v3298_v41 }
 0xcea   :  { %v1514_v44 = vmul.f32 %v1506_v10, %v1502_v35  ;;  %v1500_v47 = vmax.f32 %v1484_v38, 0.0  ;;  %v1523_v62 = vadd.f32 %v1518_v39, %v1511_v49  ;;  %2757 = vmatprep.subr.bf16.mxu1 %v3021_v1 }
 0xceb   :  { %v1527_v9 = vpack.c.bf16 %v1520_v18, %v1519_v23  ;;  %1660 = vrot.lane.b32.xlu0 %v1658_v8, %s3024_s16 }
 0xcec   :  { %v1526_v33 = vadd.f32 %v1518_v39, %v1514_v44  ;;  %v1512_v58 = vmul.f32 %v1506_v10, %v1500_v47  ;;  %v1609_v10 = vpack.c.bf16 %v1595_v7, %v1594_v25  ;;  %v1589_v38 = vpop.permute.xlu0 %1588 }
 0xcee   :  { %v1530_v54 = vpack.c.bf16 %v1526_v33, %v1525_v29  ;;  %v1524_v37 = vadd.f32 %v1518_v39, %v1512_v58  ;;  %2758 = vmatpush3.bf16.msra.mxu1 %v1609_v10 }
 0xcf0   :  { %2744 = vmatpush3.bf16.msra.mxu0 %v1530_v54  ;;  %v1529_v6 = vpack.c.bf16 %v1524_v37, %v1523_v62 }
 0xcf1   :  { %2745 = vmatprep.subr.bf16.mxu0 %v3021_v1 }
 0xcf4   :  { %2746 = vmatpush3.bf16.msra.mxu0 %v1529_v6 }
 0xcf5   :  { %2747 = vmatprep.subr.bf16.mxu0 %v3021_v1 }
 0xcf8   :  { %2748 = vmatpush3.bf16.msra.mxu0 %v1528_v11 }
 0xcf9   :  { %2749 = vmatprep.subr.bf16.mxu0 %v3021_v1 }
 0xcfc   :  { %2750 = vmatpush3.bf16.msra.mxu0 %v1527_v9 }
 0xcff   :  { %2752 = vmatmul.mubr.msk.bf16.vlgmr.msra.gmra.mxu0 %vm267_vm14, %v3261_v2 }
 0xd00   :  { %2765 = vmatprep.mubr.msk.bf16.mxu0 %vm328_vm3, %v3309_v61 }
 0xd5d   :  { %v1661_v29 = vpop.permute.xlu0 %1660 }
 0xdbf   :  { %v1565_v61 = vpop.f32.mrf.mxu0 }
 0xdc0   :  { %v1582_v27 = vmul.f32 %v3545_v30, %v1565_v61 }
 0xdc1   :  { %v2753_v34 = vpop.f32.mrf.mxu0 }
 0xdc2   :  { %v3551_v44 = vadd.f32 %v1587_v40, %v1582_v27 }
 0xdc3   :  { %v1568_v35 = vpop.f32.mrf.mxu0 }
 0xdc4   :  { %v1583_v39 = vmul.f32 %v3547_v31, %v1568_v35  ;;  %v1825_v35 = vrot.slane %v3588_v63, %v3302_v45 }
 0xdc5   :  { %v2754_v42 = vpop.f32.mrf.mxu0 }
 0xdc6   :  { %v3553_v47 = vadd.f32 %v1589_v38, %v1583_v39 }
 0xdc8   :  { %v1608_v53 = vpack.c.bf16 %v3553_v47, %v3551_v44 }
 0xdca   :  { %2760 = vmatmul.mubr.msk.bf16.vlgmr.msra.gmra.mxu1 %vm815_vm11, %v1608_v53 }
 0xdcb   :  { %2775 = vmatprep.mubr.msk.bf16.mxu1 %vm328_vm3, %v3233_v51 }
 0xe8a   :  { %v1648_v48 = vpop.f32.mrf.mxu1 }
 0xe8b   :  { %v1663_v58 = vadd.f32 %v1661_v29, %v1648_v48 }
 0xe8c   :  { %v2761_v49 = vpop.f32.mrf.mxu1 }
 0xe8d   :  { %v1665_v15 = vmax.f32 %v1663_v58, 0.0 }
 0xe8e   :  { %v1651_v33 = vpop.f32.mrf.mxu1 }
 0xe8f   :  { %v1664_v50 = vadd.f32 %v1661_v29, %v1651_v33  ;;  %v1667_v56 = vpack.c.bf16 %v1651_v33, %v1648_v48 }
 0xe90   :  { %v2762_v54 = vpop.f32.mrf.mxu1 }
 0xe91   :  { %v1666_v37 = vmax.f32 %v1664_v50, 0.0  ;;  %1669 = vrot.lane.b32.xlu1 %v1667_v56, %s3025_s6  ;;  %2773 = vmatprep.subr.bf16.mxu1 %v1667_v56  ;;  %v1837_v50 = vrot.slane %v3588_v63, %v3271_v4 }
 0xe92   :  { %2774 = vmatpush3.bf16.msra.mxu1 %v1667_v56 }
 0xe93   :  { %2135 = vrot.lane.b32.xlu0 %v1666_v37, %s3024_s16 }
 0xe95   :  { %2133 = vrot.lane.b32.xlu1 %v1665_v15, %s3024_s16  ;;  %2776 = vmatmul.mubr.msk.bf16.vlgmr.msra.gmra.mxu1 %vm328_vm3, %v3245_v55  ;;  %v1600_v55 = vld [vmem:[%s3726_s11 + $0x10] sm:$0xff] }
 0xe96   :  { %2779 = vmatprep.mubr.msk.bf16.mxu1 %vm328_vm3, %v3252_v60  ;;  %v1601_v60 = vld [vmem:[%s3726_s11 + $0x18] sm:$0xff] }
 0xe9d   :  { %2780 = vmatmul.mubr.msk.bf16.gmra.mxu1 %vm328_vm3, %v3258_v0  ;;  %v1851_v0 = vpack.c.bf16 %v1601_v60, %v1600_v55 }
 0xf03   :  { %v1670_v51 = vpop.permute.xlu1 %1669 }
 0xf04   :  { %2763 = vmatprep.subr.bf16.mxu0 %v1670_v51 }
 0xf05   :  { %2764 = vmatpush3.bf16.msra.mxu0 %v1670_v51 }
 0xf06   :  { %2783 = vmatprep.subr.bf16.mxu0 %v1851_v0 }
 0xf08   :  { %2766 = vmatmul.mubr.msk.bf16.vlgmr.msra.gmra.mxu0 %vm328_vm3, %v3342_v17  ;;  %v1598_v17 = vld [vmem:[%s3726_s11] sm:$0xff] }
 0xf09   :  { %2769 = vmatprep.mubr.msk.bf16.mxu0 %vm328_vm3, %v3346_v28  ;;  %2784 = vmatpush3.bf16.msra.mxu0 %v1851_v0  ;;  %v1599_v28 = vld [vmem:[%s3726_s11 + $0x8] sm:$0xff] }
 0xf10   :  { %2770 = vmatmul.mubr.msk.bf16.gmra.mxu0 %vm328_vm3, %v3356_v32  ;;  %v1850_v32 = vpack.c.bf16 %v1599_v28, %v1598_v17 }
 0xf12   :  { %2785 = vmatprep.subr.bf16.mxu0 %v1850_v32 }
 0xf13   :  { %2786 = vmatpush3.bf16.msra.mxu0 %v1850_v32 }
 0xf14   :  { %2807 = vmatprep.subr.bf16.mxu0 %v3021_v1 }
 0xf55   :  { %v2777_v59 = vpop.f32.mrf.mxu1 }
 0xf57   :  { %v1771_v62 = vpop.f32.mrf.mxu1 }
 0xf59   :  { %v2778_v20 = vpop.f32.mrf.mxu1 }
 0xf5b   :  { %v1774_v6 = vpop.f32.mrf.mxu1 }
 0xf5d   :  { %v2781_v23 = vpop.f32.mrf.mxu1 }
 0xf5f   :  { %v1787_v10 = vpop.f32.mrf.mxu1 }
 0xf61   :  { %v2782_v48 = vpop.f32.mrf.mxu1 }
 0xf63   :  { %v1790_v17 = vpop.f32.mrf.mxu1 }
 0xfc8   :  { %v2767_v36 = vpop.f32.mrf.mxu0 }
 0xfc9   :  { %v1780_v11 = vadd.f32 %v2777_v59, %v2767_v36 }
 0xfca   :  { %v1706_v18 = vpop.f32.mrf.mxu0 }
 0xfcb   :  { %v1772_v9 = vadd.f32 %v1771_v62, %v1706_v18  ;;  %v1808_v16 = vadd.f32 %v1805_v14, %v1780_v11 }
 0xfcc   :  { %v2768_v22 = vpop.f32.mrf.mxu0 }
 0xfcd   :  { %v1806_v24 = vadd.f32 %v1805_v14, %v1772_v9  ;;  %v1783_v25 = vadd.f32 %v2778_v20, %v2768_v22  ;;  %v1816_v27 = vmax.f32 %v1808_v16, 0.0 }
 0xfce   :  { %v1709_v7 = vpop.f32.mrf.mxu0 }
 0xfcf   :  { %v1814_v8 = vmax.f32 %v1806_v24, 0.0  ;;  %v1809_v61 = vadd.f32 %v1805_v14, %v1783_v25  ;;  %v1775_v34 = vadd.f32 %v1774_v6, %v1709_v7  ;;  %v1828_v56 = vmul.f32 %v1825_v35, %v1816_v27 }
 0xfd0   :  { %v2771_v38 = vpop.f32.mrf.mxu0 }
 0xfd1   :  { %v1817_v39 = vmax.f32 %v1809_v61, 0.0  ;;  %v1807_v40 = vadd.f32 %v1805_v14, %v1775_v34  ;;  %v1796_v42 = vadd.f32 %v2781_v23, %v2771_v38  ;;  %v1826_v29 = vmul.f32 %v1825_v35, %v1814_v8 }
 0xfd2   :  { %v1722_v53 = vpop.f32.mrf.mxu0  ;;  %v1840_v62 = vadd.f32 %v1837_v50, %v1828_v56 }
 0xfd3   :  { %v1829_v49 = vmul.f32 %v1825_v35, %v1817_v39  ;;  %v1815_v33 = vmax.f32 %v1807_v40, 0.0  ;;  %v1788_v58 = vadd.f32 %v1787_v10, %v1722_v53  ;;  %v1812_v15 = vadd.f32 %v1805_v14, %v1796_v42  ;;  %v1602_v40 = vld [vmem:[%s3726_s11 + $0x20] sm:$0xff]  ;;  %v1603_v42 = vld [vmem:[%s3726_s11 + $0x28] sm:$0xff] }
 0xfd4   :  { %v2772_v54 = vpop.f32.mrf.mxu0  ;;  %v1838_v28 = vadd.f32 %v1837_v50, %v1826_v29  ;;  %v1969_v53 = vpack.c.bf16 %v1603_v42, %v1602_v40 }
 0xfd5   :  { %v1827_v37 = vmul.f32 %v1825_v35, %v1815_v33  ;;  %v1810_v51 = vadd.f32 %v1805_v14, %v1788_v58  ;;  %v1799_v55 = vadd.f32 %v2782_v48, %v2772_v54  ;;  %v1841_v60 = vadd.f32 %v1837_v50, %v1829_v49 }
 0xfd6   :  { %v1725_v0 = vpop.f32.mrf.mxu0  ;;  %v1820_v36 = vmax.f32 %v1812_v15, 0.0  ;;  %v1855_v48 = vrot.slane %v3588_v63, %v3504_v57  ;;  %v1944_v15 = vrot.slane %v3588_v63, %v1386_v46 }
 0xfd7   :  { %v1839_v32 = vadd.f32 %v1837_v50, %v1827_v37  ;;  %v1813_v59 = vadd.f32 %v1805_v14, %v1799_v55  ;;  %v1818_v20 = vmax.f32 %v1810_v51, 0.0  ;;  %v1791_v6 = vadd.f32 %v1790_v17, %v1725_v0 }
 0xfd8   :  { %v1847_v23 = vpack.c.bf16 %v1841_v60, %v1840_v62  ;;  %v1832_v25 = vmul.f32 %v1825_v35, %v1820_v36  ;;  %v1956_v62 = vrot.slane %v3588_v63, %v1398_v13 }
 0xfd9   :  { %v1821_v11 = vmax.f32 %v1813_v59, 0.0  ;;  %v1846_v18 = vpack.c.bf16 %v1839_v32, %v1838_v28  ;;  %v1811_v9 = vadd.f32 %v1805_v14, %v1791_v6  ;;  %v1830_v22 = vmul.f32 %v1825_v35, %v1818_v20  ;;  %v1604_v14 = vld [vmem:[%s3726_s11 + $0x30] sm:$0xff] }
 0xfda   :  { %v1844_v34 = vadd.f32 %v1837_v50, %v1832_v25 }
 0xfdb   :  { %v1833_v16 = vmul.f32 %v1825_v35, %v1821_v11  ;;  %2787 = vmatprep.mubr.msk.bf16.mxu0 %vm815_vm11, %v1846_v18  ;;  %v1819_v24 = vmax.f32 %v1811_v9, 0.0  ;;  %v1842_v8 = vadd.f32 %v1837_v50, %v1830_v22 }
 0xfdc   :  { %2788 = vmatmul.mubr.msk.bf16.vlgmr.msra.gmra.mxu0 %vm815_vm11, %v1847_v23 }
 0xfdd   :  { %v1831_v7 = vmul.f32 %v1825_v35, %v1819_v24  ;;  %v1845_v10 = vadd.f32 %v1837_v50, %v1833_v16  ;;  %v1605_v35 = vld [vmem:[%s3726_s11 + $0x38] sm:$0xff] }
 0xfde   :  { %v1970_v39 = vpack.c.bf16 %v1605_v35, %v1604_v14 }
 0xfdf   :  { %v1843_v61 = vadd.f32 %v1837_v50, %v1831_v7  ;;  %v1849_v38 = vpack.c.bf16 %v1845_v10, %v1844_v34 }
 0xfe0   :  { %2795 = vmatprep.subr.bf16.mxu1 %v1970_v39 }
 0xfe1   :  { %v1848_v27 = vpack.c.bf16 %v1843_v61, %v1842_v8  ;;  %2796 = vmatpush3.bf16.msra.mxu1 %v1970_v39 }
 0xfe2   :  { %2797 = vmatprep.subr.bf16.mxu1 %v1969_v53 }
 0xfe3   :  { %2791 = vmatprep.mubr.msk.bf16.mxu0 %vm815_vm11, %v1848_v27 }
 0xfe4   :  { %2792 = vmatmul.mubr.msk.bf16.gmra.mxu0 %vm815_vm11, %v1849_v38 }
 0xfe5   :  { %2815 = vmatprep.mubr.msk.bf16.mxu0 %vm3023_vm0, %v3021_v1  ;;  %2798 = vmatpush3.bf16.msra.mxu1 %v1969_v53 }
 0xfe6   :  { %2819 = vmatprep.subr.bf16.mxu1 %v3021_v1 }
0x109c   :  { %v2789_v29 = vpop.f32.mrf.mxu0 }
0x109d   :  { %v1911_v49 = vadd.f32 %v2789_v29, %v1855_v48 }
0x109e   :  { %v1902_v33 = vpop.f32.mrf.mxu0 }
0x109f   :  { %v1903_v58 = vadd.f32 %v1902_v33, %v1855_v48  ;;  %v1935_v37 = vmax.f32 %v1911_v49, 0.0 }
0x10a0   :  { %v2790_v50 = vpop.f32.mrf.mxu0 }
0x10a1   :  { %v1933_v56 = vmax.f32 %v1903_v58, 0.0  ;;  %v1914_v54 = vadd.f32 %v2790_v50, %v1855_v48  ;;  %v1947_v59 = vmul.f32 %v1944_v15, %v1935_v37 }
0x10a2   :  { %v1905_v51 = vpop.f32.mrf.mxu0 }
0x10a3   :  { %v1936_v55 = vmax.f32 %v1914_v54, 0.0  ;;  %v1906_v60 = vadd.f32 %v1905_v51, %v1855_v48  ;;  %v1945_v0 = vmul.f32 %v1944_v15, %v1933_v56  ;;  %v1959_v16 = vadd.f32 %v1956_v62, %v1947_v59 }
0x10a4   :  { %v2793_v32 = vpop.f32.mrf.mxu0  ;;  %v1974_v56 = vrot.slane %v3588_v63, %v1416_v12  ;;  %v2075_v12 = vrot.slane %v3540_v26, %v3298_v41 }
0x10a5   :  { %v1948_v17 = vmul.f32 %v1944_v15, %v1936_v55  ;;  %v1934_v28 = vmax.f32 %v1906_v60, 0.0  ;;  %v1927_v6 = vadd.f32 %v2793_v32, %v1855_v48  ;;  %v1957_v23 = vadd.f32 %v1956_v62, %v1945_v0 }
0x10a6   :  { %v1918_v36 = vpop.f32.mrf.mxu0  ;;  %v2063_v0 = vrot.slane %v3588_v63, %v1505_v21 }
0x10a7   :  { %v1946_v20 = vmul.f32 %v1944_v15, %v1934_v28  ;;  %v1960_v11 = vadd.f32 %v1956_v62, %v1948_v17  ;;  %v1919_v18 = vadd.f32 %v1918_v36, %v1855_v48  ;;  %v1939_v7 = vmax.f32 %v1927_v6, 0.0 }
0x10a8   :  { %v2794_v46 = vpop.f32.mrf.mxu0 }
0x10a9   :  { %v1958_v9 = vadd.f32 %v1956_v62, %v1946_v20  ;;  %v1937_v22 = vmax.f32 %v1919_v18, 0.0  ;;  %v1930_v24 = vadd.f32 %v2794_v46, %v1855_v48  ;;  %v1966_v8 = vpack.c.bf16 %v1960_v11, %v1959_v16 }
0x10aa   :  { %v1921_v10 = vpop.f32.mrf.mxu0  ;;  %v1951_v14 = vmul.f32 %v1944_v15, %v1939_v7 }
0x10ab   :  { %v1965_v25 = vpack.c.bf16 %v1958_v9, %v1957_v23  ;;  %v1940_v61 = vmax.f32 %v1930_v24, 0.0  ;;  %v1922_v34 = vadd.f32 %v1921_v10, %v1855_v48  ;;  %v1949_v13 = vmul.f32 %v1944_v15, %v1937_v22 }
0x10ac   :  { %v1963_v53 = vadd.f32 %v1956_v62, %v1951_v14 }
0x10ad   :  { %2799 = vmatprep.mubr.msk.bf16.mxu1 %vm815_vm11, %v1965_v25  ;;  %v1952_v27 = vmul.f32 %v1944_v15, %v1940_v61  ;;  %v1938_v38 = vmax.f32 %v1922_v34, 0.0  ;;  %v1961_v40 = vadd.f32 %v1956_v62, %v1949_v13 }
0x10ae   :  { %2800 = vmatmul.mubr.msk.bf16.vlgmr.msra.gmra.mxu1 %vm815_vm11, %v1966_v8 }
0x10af   :  { %v1950_v35 = vmul.f32 %v1944_v15, %v1938_v38  ;;  %v1964_v39 = vadd.f32 %v1956_v62, %v1952_v27 }
0x10b1   :  { %v1962_v42 = vadd.f32 %v1956_v62, %v1950_v35  ;;  %v1968_v49 = vpack.c.bf16 %v1964_v39, %v1963_v53 }
0x10b3   :  { %v1967_v29 = vpack.c.bf16 %v1962_v42, %v1961_v40 }
0x10b5   :  { %2803 = vmatprep.mubr.msk.bf16.mxu1 %vm815_vm11, %v1967_v29 }
0x10b6   :  { %2804 = vmatmul.mubr.msk.bf16.gmra.mxu1 %vm815_vm11, %v1968_v49 }
0x10b7   :  { %2821 = vmatprep.mubr.msk.bf16.mxu1 %vm3023_vm0, %v3021_v1 }
0x116e   :  { %v2801_v48 = vpop.f32.mrf.mxu1 }
0x116f   :  { %v2030_v32 = vadd.f32 %v2801_v48, %v1974_v56  ;;  %v2134_v48 = vpop.permute.xlu1 %2133 }
0x1170   :  { %v2021_v33 = vpop.f32.mrf.mxu1 }
0x1171   :  { %v2054_v46 = vmax.f32 %v2030_v32, 0.0  ;;  %v2022_v16 = vadd.f32 %v2021_v33, %v1974_v56 }
0x1172   :  { %v2802_v58 = vpop.f32.mrf.mxu1 }
0x1173   :  { %v2033_v17 = vadd.f32 %v2802_v58, %v1974_v56  ;;  %v2066_v8 = vmul.f32 %v2063_v0, %v2054_v46  ;;  %v2052_v61 = vmax.f32 %v2022_v16, 0.0 }
0x1174   :  { %v2024_v50 = vpop.f32.mrf.mxu1 }
0x1175   :  { %v2055_v11 = vmax.f32 %v2033_v17, 0.0  ;;  %v2025_v18 = vadd.f32 %v2024_v50, %v1974_v56  ;;  %v2078_v38 = vadd.f32 %v2075_v12, %v2066_v8  ;;  %v2064_v14 = vmul.f32 %v2063_v0, %v2052_v61 }
0x1176   :  { %v2805_v54 = vpop.f32.mrf.mxu1 }
0x1177   :  { %v2046_v37 = vadd.f32 %v2805_v54, %v1974_v56  ;;  %v2067_v24 = vmul.f32 %v2063_v0, %v2055_v11  ;;  %v2053_v25 = vmax.f32 %v2025_v18, 0.0  ;;  %v2076_v40 = vadd.f32 %v2075_v12, %v2064_v14  ;;  %v2191_v11 = vld [vmem:[%s3728_s13 + $0x20] sm:$0xff]  ;;  %v2192_v18 = vld [vmem:[%s3728_s13 + $0x28] sm:$0xff] }
0x1178   :  { %v2037_v15 = vpop.f32.mrf.mxu1 }
0x1179   :  { %v2058_v51 = vmax.f32 %v2046_v37, 0.0  ;;  %v2038_v55 = vadd.f32 %v2037_v15, %v1974_v56  ;;  %v2079_v26 = vadd.f32 %v2075_v12, %v2067_v24  ;;  %v2065_v13 = vmul.f32 %v2063_v0, %v2053_v25 }
0x117a   :  { %v2806_v60 = vpop.f32.mrf.mxu1  ;;  %v2141_v37 = vadd.f32 %v3551_v44, %v3435_v5  ;;  %v2189_v5 = vld [vmem:[%s3728_s13 + $0x10] sm:$0xff] }
0x117b   :  { %v2049_v28 = vadd.f32 %v2806_v60, %v1974_v56  ;;  %v2070_v62 = vmul.f32 %v2063_v0, %v2058_v51  ;;  %v2056_v20 = vmax.f32 %v2038_v55, 0.0  ;;  %v2085_v35 = vpack.c.bf16 %v2079_v26, %v2078_v38  ;;  %v2325_v26 = vld [vmem:[%s3730_s15 + $0x18] sm:$0xff]  ;;  %v2323_v38 = vld [vmem:[%s3730_s15 + $0x8] sm:$0xff] }
0x117c   :  { %v2040_v59 = vpop.f32.mrf.mxu1  ;;  %v2077_v39 = vadd.f32 %v2075_v12, %v2065_v13 }
0x117d   :  { %v2059_v6 = vmax.f32 %v2049_v28, 0.0  ;;  %v2041_v36 = vadd.f32 %v2040_v59, %v1974_v56  ;;  %v2082_v3 = vadd.f32 %v2075_v12, %v2070_v62  ;;  %v2068_v22 = vmul.f32 %v2063_v0, %v2056_v20  ;;  %v2136_v56 = vpop.permute.xlu0 %2135 }
0x117e   :  { %v2084_v42 = vpack.c.bf16 %v2077_v39, %v2076_v40 }
0x117f   :  { %v2071_v23 = vmul.f32 %v2063_v0, %v2059_v6  ;;  %v2057_v9 = vmax.f32 %v2041_v36, 0.0  ;;  %v2080_v34 = vadd.f32 %v2075_v12, %v2068_v22 }
0x1181   :  { %v2083_v21 = vadd.f32 %v2075_v12, %v2071_v23  ;;  %v2069_v63 = vmul.f32 %v2063_v0, %v2057_v9  ;;  %v2265_v23 = vpack.c.bf16 %v2192_v18, %v2191_v11 }
0x1183   :  { %v2087_v7 = vpack.c.bf16 %v2083_v21, %v2082_v3  ;;  %v2081_v10 = vadd.f32 %v2075_v12, %v2069_v63 }
0x1185   :  { %2808 = vmatpush3.bf16.msra.mxu0 %v2087_v7  ;;  %v2086_v27 = vpack.c.bf16 %v2081_v10, %v2080_v34 }
0x1186   :  { %2809 = vmatprep.subr.bf16.mxu0 %v3021_v1 }
0x1189   :  { %2810 = vmatpush3.bf16.msra.mxu0 %v2086_v27  ;;  %v2322_v27 = vld [vmem:[%s3730_s15] sm:$0xff] }
0x118a   :  { %2811 = vmatprep.subr.bf16.mxu0 %v3021_v1  ;;  %v2327_v14 = vpack.c.bf16 %v2323_v38, %v2322_v27 }
0x118d   :  { %2812 = vmatpush3.bf16.msra.mxu0 %v2085_v35 }
0x118e   :  { %2813 = vmatprep.subr.bf16.mxu0 %v3021_v1 }
0x1191   :  { %2814 = vmatpush3.bf16.msra.mxu0 %v2084_v42 }
0x1192   :  { %2825 = vmatprep.subr.bf16.mxu0 %v3021_v1 }
0x1194   :  { %2816 = vmatmul.mubr.msk.bf16.vlgmr.msra.gmra.mxu0 %vm267_vm14, %v3261_v2  ;;  %v2142_v2 = vadd.f32 %v3553_v47, %v3437_v52  ;;  %v2190_v52 = vld [vmem:[%s3728_s13 + $0x18] sm:$0xff]  ;;  %v2195_v47 = vld [vmem:[%s3729_s14] sm:$0xf]  ;;  %vm2379_vm14 = vcmask 17408  }
0x1195   :  { %2829 = vmatprep.mubr.msk.bf16.mxu0 %vm3023_vm0, %v3021_v1  ;;  %v2199_v0 = vrot.slane %v2195_v47, %v3298_v41  ;;  %v2204_v32 = vrot.slane %v2195_v47, %v3302_v45  ;;  %v2193_v41 = vld [vmem:[%s3728_s13 + $0x30] sm:$0xff]  ;;  %v2212_v9 = vrot.slane %v2195_v47, %v3271_v4  ;;  %v2270_v35 = vrot.slane %v2195_v47, %v3504_v57 }
0x1196   :  { %v2324_v4 = vld [vmem:[%s3730_s15 + $0x10] sm:$0xff]  ;;  %s3026_s15 = smov [#allocation10]  }
0x1197   :  { %v2328_v13 = vpack.c.bf16 %v2325_v26, %v2324_v4  ;;  %s2399_s26 = sshll.u32 %s3026_s15, 4  ;;  %s2400_s26 = int_to_ptr.vmem [resolvable:$true] %s2399_s26 }
0x1198   :  { %s2986_s2 = scalar_lea.vmem %s2400_s26, 32  ;;  %p2991_p7 = scmp.lt.s32.totalorder %s2400_s26, %s2400_s26 }
0x1199   :  { %p2987_p6 = scmp.ne.s32.totalorder %s2400_s26, %s2986_s2  ;;  %p2992_p8 = scmp.lt.s32.totalorder %s2986_s2, %s2986_s2 }
0x119b   :  { %p2993_p9 = por %p2992_p8, %p2991_p7 }
0x119d   :  { %p2994_p10 = pnand %p2993_p9, %p2987_p6 }
0x1254   :  { %v2122_v53 = vpop.f32.mrf.mxu0 }
0x1255   :  { %v2129_v29 = vmul.f32 %v2122_v53, %v3545_v30  ;;  %v2208_v30 = vpack.c.bf16 %v2190_v52, %v2189_v5 }
0x1256   :  { %v2817_v49 = vpop.f32.mrf.mxu0 }
0x1257   :  { %v2139_v58 = vadd.f32 %v2134_v48, %v2129_v29  ;;  %2826 = vmatpush3.bf16.msra.mxu0 %v2208_v30 }
0x1258   :  { %v2125_v33 = vpop.f32.mrf.mxu0  ;;  %2827 = vmatprep.subr.bf16.mxu0 %v3021_v1 }
0x1259   :  { %v2130_v50 = vmul.f32 %v2125_v33, %v3547_v31  ;;  %v2143_v51 = vadd.f32 %v2141_v37, %v2139_v58  ;;  %v2187_v31 = vld [vmem:[%s3728_s13] sm:$0xff]  ;;  %v2489_v37 = vld [vmem:[#allocation8] ss:$0 sm:$0xff] }
0x125a   :  { %v2818_v54 = vpop.f32.mrf.mxu0 }
0x125b   :  { %v2140_v15 = vadd.f32 %v2136_v56, %v2130_v50 }
0x125d   :  { %v2144_v55 = vadd.f32 %v2142_v2, %v2140_v15 }
0x125f   :  { %v2145_v60 = vpack.c.bf16 %v2144_v55, %v2143_v51 }
0x1261   :  { %2820 = vmatpush3.bf16.msra.mxu1 %v2145_v60 }
0x1262   :  { %2833 = vmatprep.subr.bf16.mxu1 %v3021_v1 }
0x1264   :  { %2822 = vmatmul.mubr.msk.bf16.vlgmr.msra.gmra.mxu1 %vm328_vm3, %v3180_v19  ;;  %v2188_v19 = vld [vmem:[%s3728_s13 + $0x8] sm:$0xff] }
0x1265   :  { %2837 = vmatprep.mubr.msk.bf16.mxu1 %vm3023_vm0, %v3021_v1  ;;  %v2207_v44 = vpack.c.bf16 %v2188_v19, %v2187_v31 }
0x1267   :  { %2828 = vmatpush3.bf16.msra.mxu0 %v2207_v44 }
0x1268   :  { %2841 = vmatprep.subr.bf16.mxu0 %v3021_v1 }
0x1324   :  { %v2180_v17 = vpop.f32.mrf.mxu1 }
0x1325   :  { %v2186_v28 = vmul.f32 %v2180_v17, %v3224_v43  ;;  %v2194_v43 = vld [vmem:[%s3728_s13 + $0x38] sm:$0xff] }
0x1326   :  { %v2823_v59 = vpop.f32.mrf.mxu1  ;;  %v2266_v45 = vpack.c.bf16 %v2194_v43, %v2193_v41 }
0x1327   :  { %v2200_v62 = vmul.f32 %v2199_v0, %v2186_v28 }
0x1328   :  { %v2183_v20 = vpop.f32.mrf.mxu1  ;;  %2834 = vmatpush3.bf16.msra.mxu1 %v2266_v45 }
0x1329   :  { %v2205_v6 = vadd.f32 %v2204_v32, %v2200_v62  ;;  %2835 = vmatprep.subr.bf16.mxu1 %v3021_v1 }
0x132a   :  { %v2824_v36 = vpop.f32.mrf.mxu1 }
0x132b   :  { %v2206_v12 = vpack.c.bf16 %v2205_v6, %v2205_v6 }
0x132c   :  { %2836 = vmatpush3.bf16.msra.mxu1 %v2265_v23 }
0x132d   :  { %2830 = vmatmul.mubr.msk.bf16.vlgmr.msra.gmra.mxu0 %vm815_vm11, %v2206_v12 }
0x132e   :  { %2845 = vmatprep.mubr.msk.bf16.mxu0 %vm3023_vm0, %v3021_v1  ;;  %2842 = vmatpush3.bf16.msra.mxu0 %v2328_v13 }
0x132f   :  { %2843 = vmatprep.subr.bf16.mxu0 %v3021_v1 }
0x1332   :  { %2844 = vmatpush3.bf16.msra.mxu0 %v2327_v14 }
0x13ed   :  { %v2250_v46 = vpop.f32.mrf.mxu0 }
0x13ee   :  { %v2251_v16 = vadd.f32 %v2250_v46, %v2212_v9 }
0x13ef   :  { %v2831_v3 = vpop.f32.mrf.mxu0 }
0x13f0   :  { %v2257_v22 = vmin.f32 %v2251_v16, 0.0  ;;  %vm2256_vm0 = vcmp.gt.f32.partialorder %v2251_v16, 0.0 }
0x13f1   :  { %v2253_v21 = vpop.f32.mrf.mxu0 }
0x13f2   :  { %v2258_v63 = vmul.f32 1.442695, %v2257_v22 }
0x13f3   :  { %v2832_v24 = vpop.f32.mrf.mxu0 }
0x13f4   :  { %2898 = vpow2.f32 %v2258_v63 }
0x1401   :  { %v2899_v25 = vpop.eup %2898 }
0x1402   :  { %v2486_v7 = vadd.f32 -1.0, %v2899_v25 }
0x1404   :  { %v2261_v10 = vmul.f32 1.6732632, %v2486_v7 }
0x1406   :  { %v2262_v8 = vsel %vm2256_vm0, %v2251_v16, %v2261_v10 }
0x1407   :  { %v2263_v61 = vmul.f32 1.050701, %v2262_v8 }
0x1409   :  { %v2264_v34 = vpack.c.bf16 %v2263_v61, %v2263_v61 }
0x140b   :  { %2838 = vmatmul.mubr.msk.bf16.vlgmr.msra.gmra.mxu1 %vm815_vm11, %v2264_v34 }
0x14cb   :  { %v2308_v39 = vpop.f32.mrf.mxu1 }
0x14cc   :  { %v2309_v40 = vadd.f32 %v2308_v39, %v2270_v35 }
0x14cd   :  { %v2839_v42 = vpop.f32.mrf.mxu1 }
0x14ce   :  { %v2315_v53 = vmin.f32 %v2309_v40, 0.0  ;;  %vm2314_vm3 = vcmp.gt.f32.partialorder %v2309_v40, 0.0 }
0x14cf   :  { %v2311_v29 = vpop.f32.mrf.mxu1 }
0x14d0   :  { %v2316_v49 = vmul.f32 1.442695, %v2315_v53 }
0x14d1   :  { %v2840_v48 = vpop.f32.mrf.mxu1 }
0x14d2   :  { %2900 = vpow2.f32 %v2316_v49 }
0x14df   :  { %v2901_v1 = vpop.eup %2900 }
0x14e0   :  { %v2488_v33 = vadd.f32 -1.0, %v2901_v1 }
0x14e2   :  { %v2319_v58 = vmul.f32 1.6732632, %v2488_v33 }
0x14e4   :  { %v2320_v50 = vsel %vm2314_vm3, %v2309_v40, %v2319_v58 }
0x14e5   :  { %v2321_v56 = vmul.f32 1.050701, %v2320_v50 }
0x14e7   :  { %v2326_v54 = vpack.c.bf16 %v2321_v56, %v2321_v56 }
0x14e9   :  { %2846 = vmatmul.mubr.msk.bf16.vlgmr.msra.gmra.mxu0 %vm815_vm11, %v2326_v54 }
0x15a9   :  { %v2373_v2 = vpop.f32.mrf.mxu0 }
0x15aa   :  { %v2374_v57 = vadd.f32 %v2489_v37, %v2373_v2 }
0x15ab   :  { %v2847_v15 = vpop.f32.mrf.mxu0 }
0x15ac   :  { %v2380_v51 = vsel %vm2379_vm14, %v2374_v57, -inf }
0x15ad   :  { %2381 = vmax.xlane.f32.xlu1 %v2380_v51  ;;  %v2376_v55 = vpop.f32.mrf.mxu0 }
0x15af   :  { %v2848_v60 = vpop.f32.mrf.mxu0 }
0x1636   :  { %v2382_v5 = vpop.xlane.xlu1 %2381 }
0x1637   :  { %v2383_v52 = vsub.f32 %v2374_v57, %v2382_v5 }
0x1639   :  { %v2384_v30 = vmul.f32 1.442695, %v2383_v52 }
0x163b   :  { %2902 = vpow2.f32 %v2384_v30 }
0x1648   :  { %v2903_v31 = vpop.eup %2902 }
0x1649   :  { %v2386_v19 = vsel %vm2379_vm14, %v2903_v31, 0.0 }
0x164a   :  { %2387 = vadd.xlane.f32.xlu0 %v2386_v19 }
0x16d3   :  { %v2388_v44 = vpop.xlane.xlu0 %2387 }
0x16d4   :  { %2904 = vlog2.f32 %v2388_v44 }
0x16e1   :  { %v2905_v47 = vpop.eup %2904 }
0x16e2   :  { %v2390_v0 = vmul.f32 0.6931472, %v2905_v47 }
0x16e4   :  { %v2391_v17 = vsub.f32 %v2383_v52, %v2390_v0 }
0x16e6   :  { %2392 = vst.msk [vmem:[#allocation10] sm:$0x3] %vm2379_vm14, %v2391_v17 }
0x16e7   :  { %2997 = shalt.err (!%p2994_p10)
}
0x16e8   :  { %2402 = dma.vmem_to_hbm [thread:$0]  %s2400_s26, 32, %s3732_s17, [#allocation4]  }
0x16e9   :  { %3012 = dma.done.wait [#allocation4], 32  }
0x16ea   :  { %3013 = vsyncadd [#allocation4], 4294967264 }
0x16eb   :  { %2406 = vsyncpa [#allocation3], 1 }
0x16ec   :  { %2407 = vsyncpa [#allocation6], 1 }
0x16ed   :  { %2408 = vsyncpa [#allocation9], 1 }
0x16ee   :  { %2409 = vsyncpa [#allocation4], 1 }

</bundles_post_ra>
